<compile_context>
chip_gen: v7x
topology: tpu7x:2x2x1
jax: 0.10.0
libtpu: 0.0.40
codegen_flags: <defaults>
</compile_context>

<pallas_src>
import functools

import jax
import jax.numpy as jnp
from jax import lax
from jax.experimental import pallas as pl
from jax.experimental.pallas import tpu as pltpu


def _round_up(a, m):
    return (a + m - 1) // m * m


def _dwconv_kernel(x_ref, w_ref, b_ref, o_ref, pad_ref, *, H, W, Wp, TC, RB,
                   UNROLL):
    # x_ref  : (1, H, W, TC)    input tile (one batch element, one channel tile)
    # w_ref  : (3, 3, TC)       depthwise taps (kh, kw, channel)
    # b_ref  : (1, TC)          bias
    # o_ref  : (1, H, W, TC)    output tile
    # pad_ref: (H+2, Wp, TC)    f32 scratch; image interior at [1:H+1, 8:8+W]
    nrb = H // RB

    # ---- build the zero-padded, f32 copy of the tile ---------------------
    # Top / bottom halo rows: full-width aligned stores.
    zrow = jnp.zeros((1, Wp, TC), jnp.float32)
    pad_ref[0:1, :, :] = zrow
    pad_ref[H + 1:H + 2, :, :] = zrow

    # Side halos: full 8-column (aligned) stores instead of 1-column masked.
    zleft = jnp.zeros((RB, 8, TC), jnp.float32)            # cols [0, 8)
    zright = jnp.zeros((RB, Wp - 8 - W, TC), jnp.float32)  # cols [8+W, Wp)

    def copy_block(rb, carry):
        r0 = pl.multiple_of(rb * RB, RB)
        pad_ref[pl.ds(r0 + 1, RB), 0:8, :] = zleft
        pad_ref[pl.ds(r0 + 1, RB), 8 + W:Wp, :] = zright
        # Upcast folded into the copy: one convert per element, not nine.
        pad_ref[pl.ds(r0 + 1, RB), 8:8 + W, :] = (
            x_ref[0, pl.ds(r0, RB), :, :].astype(jnp.float32))
        return carry

    lax.fori_loop(0, nrb, copy_block, 0, unroll=UNROLL)

    # ---- hoist the 9 weight taps and the bias (loaded/upcast exactly once)
    w_taps = [[w_ref[kh:kh + 1, kw:kw + 1, :].astype(jnp.float32)
               for kw in range(3)] for kh in range(3)]
    b_row = b_ref[0:1, :].astype(jnp.float32).reshape(1, 1, TC)

    # ---- 9-tap MAC; acc (RB, W, TC) stays register-resident --------------
    def compute_block(rb, carry):
        r0 = pl.multiple_of(rb * RB, RB)

        def tap(kh, kw):
            # output rows [r0, r0+RB), cols [0, W); interior offset (+1, +8)
            return pad_ref[pl.ds(r0 + kh, RB), kw + 7:kw + 7 + W, :]

        # Bias folded into the first tap: no trailing "+ bias" VALU add.
        acc = tap(0, 0) * w_taps[0][0] + b_row
        for kh in range(3):
            for kw in range(3):
                if kh == 0 and kw == 0:
                    continue
                acc = acc + tap(kh, kw) * w_taps[kh][kw]
        o_ref[0, pl.ds(r0, RB), :, :] = acc.astype(o_ref.dtype)
        return carry

    lax.fori_loop(0, nrb, compute_block, 0, unroll=UNROLL)


def _channel_tiling(C):
    # Lane-dense 128-wide tiles whenever possible; pad C up for awkward C.
    if C % 128 == 0:
        return 128, C
    if C < 128:
        return C, C
    return 128, _round_up(C, 128)


def _pick_row_block(H, W, TC, target_bytes=64 * 1024):
    # f32 accumulator (RB, W, TC) capped at ~16 vregs; RB must divide H.
    rb = max(1, min(H, target_bytes // max(1, W * TC * 4)))
    while H % rb:
        rb -= 1
    return rb


def dwconv(x, weight, bias, H, W):
    """Depthwise 3x3 conv, stride 1, padding 1, groups=C, with bias.

    x:      (B, N, C) with N == H*W   (token layout, as in the PyTorch module)
    weight: (C, 1, 3, 3)  -- torch nn.Conv2d(dim, dim, 3, groups=dim) weight
    bias:   (C,)
    """
    B, N, C = x.shape
    assert N == H * W, "sequence length must equal H*W"
    assert weight.shape == (C, 1, 3, 3)
    assert bias.shape == (C,)

    TC, Cp = _channel_tiling(C)
    RB = _pick_row_block(H, W, TC)
    nrb = H // RB
    unroll = True if nrb <= 8 else 8
    Wp = 16 + _round_up(W, 8)        # 8 zero cols left, >=8 zero cols right

    # torch (C,1,3,3) -> channels-last taps (3,3,C); tiny, done once.
    w_hwc = jnp.transpose(weight[:, 0, :, :], (1, 2, 0))
    b2d = bias.reshape(1, C)
    x_img = x.reshape(B, H, W, C)    # (B,N,C) is already HWC-major: free

    if Cp != C:                      # lane-dense tiles for C > 128, C % 128 != 0
        padc = Cp - C
        x_img = jnp.pad(x_img, ((0, 0),) * 3 + ((0, padc),))
        w_hwc = jnp.pad(w_hwc, ((0, 0), (0, 0), (0, padc)))
        b2d = jnp.pad(b2d, ((0, 0), (0, padc)))

    itemsize = jnp.dtype(x.dtype).itemsize
    # Per-step VMEM: double-buffered in/out blocks + f32 padded scratch.
    need = (4 * H * W * TC * itemsize + (H + 2) * Wp * TC * 4
            + 4 * 10 * TC * itemsize)
    vmem_limit = int(min(128 * 2 ** 20, max(32 * 2 ** 20, int(need * 1.25))))
    # TODO(synk): for very large feature maps (H*W beyond ~19k on v7x's 64 MiB
    # VMEM, or to feed both v7x TensorCores when B*(C/128) < 2) add an H-tile
    # grid axis with a 2-row halo via manual DMA instead of whole planes.

    kernel = functools.partial(_dwconv_kernel, H=H, W=W, Wp=Wp, TC=TC, RB=RB,
                               UNROLL=unroll)

    cost = pl.CostEstimate(
        flops=18 * B * H * W * Cp,
        transcendentals=0,
        bytes_accessed=(2 * B * H * W * Cp + 10 * Cp) * itemsize)

    out = pl.pallas_call(
        kernel,
        out_shape=jax.ShapeDtypeStruct((B, H, W, Cp), x.dtype),
        grid=(Cp // TC, B),          # batch innermost: weight/bias blocks keep
        in_specs=[                   # their block index -> no re-DMA per step
            pl.BlockSpec((1, H, W, TC), lambda c, b: (b, 0, 0, c)),
            pl.BlockSpec((3, 3, TC), lambda c, b: (0, 0, c)),
            pl.BlockSpec((1, TC), lambda c, b: (0, c)),
        ],
        out_specs=pl.BlockSpec((1, H, W, TC), lambda c, b: (b, 0, 0, c)),
        scratch_shapes=[pltpu.VMEM((H + 2, Wp, TC), jnp.float32)],
        compiler_params=pltpu.CompilerParams(
            dimension_semantics=("parallel", "parallel"),
            vmem_limit_bytes=vmem_limit),
        cost_estimate=cost,
    )(x_img, w_hwc, b2d)

    if Cp != C:
        out = out[..., :C]
    return out.reshape(B, N, C)


def _reference_dwconv(x, weight, bias, H, W):
    """Pure-JAX shift-based depthwise conv reference (torch weight layout)."""
    B, N, C = x.shape
    x_img = x.reshape(B, H, W, C)
    x_pad = jnp.pad(x_img, ((0, 0), (1, 1), (1, 1), (0, 0)))
    out = jnp.zeros((B, H, W, C), jnp.float32)
    for kh in range(3):
        for kw in range(3):
            out = out + (x_pad[:, kh:kh + H, kw:kw + W, :].astype(jnp.float32)
                         * weight[:, 0, kh, kw].astype(jnp.float32))
    out = out + bias.astype(jnp.float32)
    return out.astype(x.dtype).reshape(B, N, C)


if __name__ == "__main__":
    key = jax.random.PRNGKey(0)

    # Case 1: lane-dense channels (C multiple of 128).
    B, C, H, W = 2, 128, 16, 16
    N = H * W
    kx, kw, kb, key = jax.random.split(key, 4)
    x = jax.random.normal(kx, (B, N, C), dtype=jnp.float32)
    weight = jax.random.normal(kw, (C, 1, 3, 3), dtype=jnp.float32) * 0.1
    bias = jax.random.normal(kb, (C,), dtype=jnp.float32) * 0.1

    out = jax.block_until_ready(dwconv(x, weight, bias, H, W))
    ref = _reference_dwconv(x, weight, bias, H, W)
    assert out.shape == (B, N, C)
    assert jnp.allclose(out, ref, atol=1e-5, rtol=1e-5)

    # Case 2: small C (< 128) exercises the whole-C lane-tile path.
    B2, C2, H2, W2 = 1, 64, 8, 8
    kx, kw, kb, key = jax.random.split(key, 4)
    x2 = jax.random.normal(kx, (B2, H2 * W2, C2), dtype=jnp.float32)
    weight2 = jax.random.normal(kw, (C2, 1, 3, 3), dtype=jnp.float32) * 0.1
    bias2 = jax.random.normal(kb, (C2,), dtype=jnp.float32) * 0.1

    out2 = jax.block_until_ready(dwconv(x2, weight2, bias2, H2, W2))
    ref2 = _reference_dwconv(x2, weight2, bias2, H2, W2)
    assert jnp.allclose(out2, ref2, atol=1e-5, rtol=1e-5)

    print("KERNEL_OK")
</pallas_src>

<mosaic_0001>
module attributes {stable_mosaic.version = 11 : i64} {
  func.func @_dwconv_kernel(%arg0: i32, %arg1: i32, %arg2: memref<1x16x16x128xf32, #tpu.memory_space<vmem>>, %arg3: memref<3x3x128xf32, #tpu.memory_space<vmem>>, %arg4: memref<1x128xf32, #tpu.memory_space<vmem>>, %arg5: memref<1x16x16x128xf32, #tpu.memory_space<vmem>>, %arg6: memref<18x32x128xf32, #tpu.memory_space<vmem>>) attributes {dimension_semantics = [#tpu.dimension_semantics<parallel>, #tpu.dimension_semantics<parallel>], iteration_bounds = array<i64: 1, 2>, scalar_prefetch = 0 : i64, scratch_operands = 1 : i64, tpu.core_type = #tpu.core_type<tc>, window_params = [{transform_indices = @transform_0, window_bounds = array<i64: 1, 16, 16, 128>}, {transform_indices = @transform_1, window_bounds = array<i64: 3, 3, 128>}, {transform_indices = @transform_2, window_bounds = array<i64: 1, 128>}, {transform_indices = @transform_3, window_bounds = array<i64: 1, 16, 16, 128>}]} {
    %cst = arith.constant 0.000000e+00 : f32
    %0 = vector.broadcast %cst : f32 to vector<1x32x128xf32>
    %c0 = arith.constant 0 : index
    %c0_0 = arith.constant 0 : index
    %c0_1 = arith.constant 0 : index
    %1 = vector.load %arg6[%c0, %c0_0, %c0_1] : memref<18x32x128xf32, #tpu.memory_space<vmem>>, vector<1x32x128xf32>
    tpu.vector_store %arg6[%c0, %c0_0, %c0_1], %0 {strides = array<i32>} : memref<18x32x128xf32, #tpu.memory_space<vmem>>, vector<1x32x128xf32>,
    %c17 = arith.constant 17 : index
    %c0_2 = arith.constant 0 : index
    %c0_3 = arith.constant 0 : index
    %2 = vector.load %arg6[%c17, %c0_2, %c0_3] : memref<18x32x128xf32, #tpu.memory_space<vmem>>, vector<1x32x128xf32>
    tpu.vector_store %arg6[%c17, %c0_2, %c0_3], %0 {strides = array<i32>} : memref<18x32x128xf32, #tpu.memory_space<vmem>>, vector<1x32x128xf32>,
    %cst_4 = arith.constant 0.000000e+00 : f32
    %3 = vector.broadcast %cst_4 : f32 to vector<8x8x128xf32>
    %cst_5 = arith.constant 0.000000e+00 : f32
    %4 = vector.broadcast %cst_5 : f32 to vector<8x8x128xf32>
    %c0_i32 = arith.constant 0 : i32
    %c8_i32 = arith.constant 8 : i32
    %5 = arith.muli %c0_i32, %c8_i32 : i32
    %6 = tpu.assume_multiple %5, 8 : i32
    %c1_i32 = arith.constant 1 : i32
    %7 = arith.addi %6, %c1_i32 : i32
    %8 = arith.index_cast %7 : i32 to index
    %c0_6 = arith.constant 0 : index
    %c0_7 = arith.constant 0 : index
    %9 = vector.load %arg6[%8, %c0_6, %c0_7] : memref<18x32x128xf32, #tpu.memory_space<vmem>>, vector<8x8x128xf32>
    tpu.vector_store %arg6[%8, %c0_6, %c0_7], %3 {strides = array<i32>} : memref<18x32x128xf32, #tpu.memory_space<vmem>>, vector<8x8x128xf32>,
    %c1_i32_8 = arith.constant 1 : i32
    %10 = arith.addi %6, %c1_i32_8 : i32
    %11 = arith.index_cast %10 : i32 to index
    %c24 = arith.constant 24 : index
    %c0_9 = arith.constant 0 : index
    %12 = vector.load %arg6[%11, %c24, %c0_9] : memref<18x32x128xf32, #tpu.memory_space<vmem>>, vector<8x8x128xf32>
    tpu.vector_store %arg6[%11, %c24, %c0_9], %4 {strides = array<i32>} : memref<18x32x128xf32, #tpu.memory_space<vmem>>, vector<8x8x128xf32>,
    %c0_10 = arith.constant 0 : index
    %13 = arith.index_cast %6 : i32 to index
    %c0_11 = arith.constant 0 : index
    %c0_12 = arith.constant 0 : index
    %14 = vector.load %arg2[%c0_10, %13, %c0_11, %c0_12] : memref<1x16x16x128xf32, #tpu.memory_space<vmem>>, vector<1x8x16x128xf32>
    %15 = vector.shape_cast %14 : vector<1x8x16x128xf32> to vector<8x16x128xf32>
    %c1_i32_13 = arith.constant 1 : i32
    %16 = arith.addi %6, %c1_i32_13 : i32
    %17 = arith.index_cast %16 : i32 to index
    %c8 = arith.constant 8 : index
    %c0_14 = arith.constant 0 : index
    %18 = vector.load %arg6[%17, %c8, %c0_14] : memref<18x32x128xf32, #tpu.memory_space<vmem>>, vector<8x16x128xf32>
    tpu.vector_store %arg6[%17, %c8, %c0_14], %15 {strides = array<i32>} : memref<18x32x128xf32, #tpu.memory_space<vmem>>, vector<8x16x128xf32>,
    %c1_i32_15 = arith.constant 1 : i32
    %c8_i32_16 = arith.constant 8 : i32
    %19 = arith.muli %c1_i32_15, %c8_i32_16 : i32
    %20 = tpu.assume_multiple %19, 8 : i32
    %c1_i32_17 = arith.constant 1 : i32
    %21 = arith.addi %20, %c1_i32_17 : i32
    %22 = arith.index_cast %21 : i32 to index
    %c0_18 = arith.constant 0 : index
    %c0_19 = arith.constant 0 : index
    %23 = vector.load %arg6[%22, %c0_18, %c0_19] : memref<18x32x128xf32, #tpu.memory_space<vmem>>, vector<8x8x128xf32>
    tpu.vector_store %arg6[%22, %c0_18, %c0_19], %3 {strides = array<i32>} : memref<18x32x128xf32, #tpu.memory_space<vmem>>, vector<8x8x128xf32>,
    %c1_i32_20 = arith.constant 1 : i32
    %24 = arith.addi %20, %c1_i32_20 : i32
    %25 = arith.index_cast %24 : i32 to index
    %c24_21 = arith.constant 24 : index
    %c0_22 = arith.constant 0 : index
    %26 = vector.load %arg6[%25, %c24_21, %c0_22] : memref<18x32x128xf32, #tpu.memory_space<vmem>>, vector<8x8x128xf32>
    tpu.vector_store %arg6[%25, %c24_21, %c0_22], %4 {strides = array<i32>} : memref<18x32x128xf32, #tpu.memory_space<vmem>>, vector<8x8x128xf32>,
    %c0_23 = arith.constant 0 : index
    %27 = arith.index_cast %20 : i32 to index
    %c0_24 = arith.constant 0 : index
    %c0_25 = arith.constant 0 : index
    %28 = vector.load %arg2[%c0_23, %27, %c0_24, %c0_25] : memref<1x16x16x128xf32, #tpu.memory_space<vmem>>, vector<1x8x16x128xf32>
    %29 = vector.shape_cast %28 : vector<1x8x16x128xf32> to vector<8x16x128xf32>
    %c1_i32_26 = arith.constant 1 : i32
    %30 = arith.addi %20, %c1_i32_26 : i32
    %31 = arith.index_cast %30 : i32 to index
    %c8_27 = arith.constant 8 : index
    %c0_28 = arith.constant 0 : index
    %32 = vector.load %arg6[%31, %c8_27, %c0_28] : memref<18x32x128xf32, #tpu.memory_space<vmem>>, vector<8x16x128xf32>
    tpu.vector_store %arg6[%31, %c8_27, %c0_28], %29 {strides = array<i32>} : memref<18x32x128xf32, #tpu.memory_space<vmem>>, vector<8x16x128xf32>,
    %c2_i32 = arith.constant 2 : i32
    %c0_29 = arith.constant 0 : index
    %c0_30 = arith.constant 0 : index
    %c0_31 = arith.constant 0 : index
    %33 = vector.load %arg3[%c0_29, %c0_30, %c0_31] : memref<3x3x128xf32, #tpu.memory_space<vmem>>, vector<1x1x128xf32>
    %c0_32 = arith.constant 0 : index
    %c1 = arith.constant 1 : index
    %c0_33 = arith.constant 0 : index
    %34 = vector.load %arg3[%c0_32, %c1, %c0_33] : memref<3x3x128xf32, #tpu.memory_space<vmem>>, vector<1x1x128xf32>
    %c0_34 = arith.constant 0 : index
    %c2 = arith.constant 2 : index
    %c0_35 = arith.constant 0 : index
    %35 = vector.load %arg3[%c0_34, %c2, %c0_35] : memref<3x3x128xf32, #tpu.memory_space<vmem>>, vector<1x1x128xf32>
    %c1_36 = arith.constant 1 : index
    %c0_37 = arith.constant 0 : index
    %c0_38 = arith.constant 0 : index
    %36 = vector.load %arg3[%c1_36, %c0_37, %c0_38] : memref<3x3x128xf32, #tpu.memory_space<vmem>>, vector<1x1x128xf32>
    %c1_39 = arith.constant 1 : index
    %c1_40 = arith.constant 1 : index
    %c0_41 = arith.constant 0 : index
    %37 = vector.load %arg3[%c1_39, %c1_40, %c0_41] : memref<3x3x128xf32, #tpu.memory_space<vmem>>, vector<1x1x128xf32>
    %c1_42 = arith.constant 1 : index
    %c2_43 = arith.constant 2 : index
    %c0_44 = arith.constant 0 : index
    %38 = vector.load %arg3[%c1_42, %c2_43, %c0_44] : memref<3x3x128xf32, #tpu.memory_space<vmem>>, vector<1x1x128xf32>
    %c2_45 = arith.constant 2 : index
    %c0_46 = arith.constant 0 : index
    %c0_47 = arith.constant 0 : index
    %39 = vector.load %arg3[%c2_45, %c0_46, %c0_47] : memref<3x3x128xf32, #tpu.memory_space<vmem>>, vector<1x1x128xf32>
    %c2_48 = arith.constant 2 : index
    %c1_49 = arith.constant 1 : index
    %c0_50 = arith.constant 0 : index
    %40 = vector.load %arg3[%c2_48, %c1_49, %c0_50] : memref<3x3x128xf32, #tpu.memory_space<vmem>>, vector<1x1x128xf32>
    %c2_51 = arith.constant 2 : index
    %c2_52 = arith.constant 2 : index
    %c0_53 = arith.constant 0 : index
    %41 = vector.load %arg3[%c2_51, %c2_52, %c0_53] : memref<3x3x128xf32, #tpu.memory_space<vmem>>, vector<1x1x128xf32>
    %c0_54 = arith.constant 0 : index
    %c0_55 = arith.constant 0 : index
    %42 = vector.load %arg4[%c0_54, %c0_55] : memref<1x128xf32, #tpu.memory_space<vmem>>, vector<1x128xf32>
    %43 = vector.shape_cast %42 : vector<1x128xf32> to vector<1x1x128xf32>
    %c0_i32_56 = arith.constant 0 : i32
    %c8_i32_57 = arith.constant 8 : i32
    %44 = arith.muli %c0_i32_56, %c8_i32_57 : i32
    %45 = tpu.assume_multiple %44, 8 : i32
    %c0_i32_58 = arith.constant 0 : i32
    %46 = arith.addi %45, %c0_i32_58 : i32
    %47 = arith.index_cast %46 : i32 to index
    %c7 = arith.constant 7 : index
    %c0_59 = arith.constant 0 : index
    %48 = vector.load %arg6[%47, %c7, %c0_59] : memref<18x32x128xf32, #tpu.memory_space<vmem>>, vector<8x16x128xf32>
    %49 = vector.broadcast %33 : vector<1x1x128xf32> to vector<8x16x128xf32>
    %50 = arith.mulf %48, %49 : vector<8x16x128xf32>
    %51 = vector.broadcast %43 : vector<1x1x128xf32> to vector<8x16x128xf32>
    %52 = arith.addf %50, %51 : vector<8x16x128xf32>
    %c0_i32_60 = arith.constant 0 : i32
    %53 = arith.addi %45, %c0_i32_60 : i32
    %54 = arith.index_cast %53 : i32 to index
    %c8_61 = arith.constant 8 : index
    %c0_62 = arith.constant 0 : index
    %55 = vector.load %arg6[%54, %c8_61, %c0_62] : memref<18x32x128xf32, #tpu.memory_space<vmem>>, vector<8x16x128xf32>
    %56 = vector.broadcast %34 : vector<1x1x128xf32> to vector<8x16x128xf32>
    %57 = arith.mulf %55, %56 : vector<8x16x128xf32>
    %58 = arith.addf %52, %57 : vector<8x16x128xf32>
    %c0_i32_63 = arith.constant 0 : i32
    %59 = arith.addi %45, %c0_i32_63 : i32
    %60 = arith.index_cast %59 : i32 to index
    %c9 = arith.constant 9 : index
    %c0_64 = arith.constant 0 : index
    %61 = vector.load %arg6[%60, %c9, %c0_64] : memref<18x32x128xf32, #tpu.memory_space<vmem>>, vector<8x16x128xf32>
    %62 = vector.broadcast %35 : vector<1x1x128xf32> to vector<8x16x128xf32>
    %63 = arith.mulf %61, %62 : vector<8x16x128xf32>
    %64 = arith.addf %58, %63 : vector<8x16x128xf32>
    %c1_i32_65 = arith.constant 1 : i32
    %65 = arith.addi %45, %c1_i32_65 : i32
    %66 = arith.index_cast %65 : i32 to index
    %c7_66 = arith.constant 7 : index
    %c0_67 = arith.constant 0 : index
    %67 = vector.load %arg6[%66, %c7_66, %c0_67] : memref<18x32x128xf32, #tpu.memory_space<vmem>>, vector<8x16x128xf32>
    %68 = vector.broadcast %36 : vector<1x1x128xf32> to vector<8x16x128xf32>
    %69 = arith.mulf %67, %68 : vector<8x16x128xf32>
    %70 = arith.addf %64, %69 : vector<8x16x128xf32>
    %c1_i32_68 = arith.constant 1 : i32
    %71 = arith.addi %45, %c1_i32_68 : i32
    %72 = arith.index_cast %71 : i32 to index
    %c8_69 = arith.constant 8 : index
    %c0_70 = arith.constant 0 : index
    %73 = vector.load %arg6[%72, %c8_69, %c0_70] : memref<18x32x128xf32, #tpu.memory_space<vmem>>, vector<8x16x128xf32>
    %74 = vector.broadcast %37 : vector<1x1x128xf32> to vector<8x16x128xf32>
    %75 = arith.mulf %73, %74 : vector<8x16x128xf32>
    %76 = arith.addf %70, %75 : vector<8x16x128xf32>
    %c1_i32_71 = arith.constant 1 : i32
    %77 = arith.addi %45, %c1_i32_71 : i32
    %78 = arith.index_cast %77 : i32 to index
    %c9_72 = arith.constant 9 : index
    %c0_73 = arith.constant 0 : index
    %79 = vector.load %arg6[%78, %c9_72, %c0_73] : memref<18x32x128xf32, #tpu.memory_space<vmem>>, vector<8x16x128xf32>
    %80 = vector.broadcast %38 : vector<1x1x128xf32> to vector<8x16x128xf32>
    %81 = arith.mulf %79, %80 : vector<8x16x128xf32>
    %82 = arith.addf %76, %81 : vector<8x16x128xf32>
    %c2_i32_74 = arith.constant 2 : i32
    %83 = arith.addi %45, %c2_i32_74 : i32
    %84 = arith.index_cast %83 : i32 to index
    %c7_75 = arith.constant 7 : index
    %c0_76 = arith.constant 0 : index
    %85 = vector.load %arg6[%84, %c7_75, %c0_76] : memref<18x32x128xf32, #tpu.memory_space<vmem>>, vector<8x16x128xf32>
    %86 = vector.broadcast %39 : vector<1x1x128xf32> to vector<8x16x128xf32>
    %87 = arith.mulf %85, %86 : vector<8x16x128xf32>
    %88 = arith.addf %82, %87 : vector<8x16x128xf32>
    %c2_i32_77 = arith.constant 2 : i32
    %89 = arith.addi %45, %c2_i32_77 : i32
    %90 = arith.index_cast %89 : i32 to index
    %c8_78 = arith.constant 8 : index
    %c0_79 = arith.constant 0 : index
    %91 = vector.load %arg6[%90, %c8_78, %c0_79] : memref<18x32x128xf32, #tpu.memory_space<vmem>>, vector<8x16x128xf32>
    %92 = vector.broadcast %40 : vector<1x1x128xf32> to vector<8x16x128xf32>
    %93 = arith.mulf %91, %92 : vector<8x16x128xf32>
    %94 = arith.addf %88, %93 : vector<8x16x128xf32>
    %c2_i32_80 = arith.constant 2 : i32
    %95 = arith.addi %45, %c2_i32_80 : i32
    %96 = arith.index_cast %95 : i32 to index
    %c9_81 = arith.constant 9 : index
    %c0_82 = arith.constant 0 : index
    %97 = vector.load %arg6[%96, %c9_81, %c0_82] : memref<18x32x128xf32, #tpu.memory_space<vmem>>, vector<8x16x128xf32>
    %98 = vector.broadcast %41 : vector<1x1x128xf32> to vector<8x16x128xf32>
    %99 = arith.mulf %97, %98 : vector<8x16x128xf32>
    %100 = arith.addf %94, %99 : vector<8x16x128xf32>
    %c0_83 = arith.constant 0 : index
    %101 = arith.index_cast %45 : i32 to index
    %c0_84 = arith.constant 0 : index
    %c0_85 = arith.constant 0 : index
    %102 = vector.load %arg5[%c0_83, %101, %c0_84, %c0_85] : memref<1x16x16x128xf32, #tpu.memory_space<vmem>>, vector<1x8x16x128xf32>
    %103 = vector.shape_cast %102 : vector<1x8x16x128xf32> to vector<8x16x128xf32>
    %104 = vector.shape_cast %100 : vector<8x16x128xf32> to vector<1x8x16x128xf32>
    tpu.vector_store %arg5[%c0_83, %101, %c0_84, %c0_85], %104 {strides = array<i32>} : memref<1x16x16x128xf32, #tpu.memory_space<vmem>>, vector<1x8x16x128xf32>,
    %c1_i32_86 = arith.constant 1 : i32
    %c8_i32_87 = arith.constant 8 : i32
    %105 = arith.muli %c1_i32_86, %c8_i32_87 : i32
    %106 = tpu.assume_multiple %105, 8 : i32
    %c0_i32_88 = arith.constant 0 : i32
    %107 = arith.addi %106, %c0_i32_88 : i32
    %108 = arith.index_cast %107 : i32 to index
    %c7_89 = arith.constant 7 : index
    %c0_90 = arith.constant 0 : index
    %109 = vector.load %arg6[%108, %c7_89, %c0_90] : memref<18x32x128xf32, #tpu.memory_space<vmem>>, vector<8x16x128xf32>
    %110 = vector.broadcast %33 : vector<1x1x128xf32> to vector<8x16x128xf32>
    %111 = arith.mulf %109, %110 : vector<8x16x128xf32>
    %112 = vector.broadcast %43 : vector<1x1x128xf32> to vector<8x16x128xf32>
    %113 = arith.addf %111, %112 : vector<8x16x128xf32>
    %c0_i32_91 = arith.constant 0 : i32
    %114 = arith.addi %106, %c0_i32_91 : i32
    %115 = arith.index_cast %114 : i32 to index
    %c8_92 = arith.constant 8 : index
    %c0_93 = arith.constant 0 : index
    %116 = vector.load %arg6[%115, %c8_92, %c0_93] : memref<18x32x128xf32, #tpu.memory_space<vmem>>, vector<8x16x128xf32>
    %117 = vector.broadcast %34 : vector<1x1x128xf32> to vector<8x16x128xf32>
    %118 = arith.mulf %116, %117 : vector<8x16x128xf32>
    %119 = arith.addf %113, %118 : vector<8x16x128xf32>
    %c0_i32_94 = arith.constant 0 : i32
    %120 = arith.addi %106, %c0_i32_94 : i32
    %121 = arith.index_cast %120 : i32 to index
    %c9_95 = arith.constant 9 : index
    %c0_96 = arith.constant 0 : index
    %122 = vector.load %arg6[%121, %c9_95, %c0_96] : memref<18x32x128xf32, #tpu.memory_space<vmem>>, vector<8x16x128xf32>
    %123 = vector.broadcast %35 : vector<1x1x128xf32> to vector<8x16x128xf32>
    %124 = arith.mulf %122, %123 : vector<8x16x128xf32>
    %125 = arith.addf %119, %124 : vector<8x16x128xf32>
    %c1_i32_97 = arith.constant 1 : i32
    %126 = arith.addi %106, %c1_i32_97 : i32
    %127 = arith.index_cast %126 : i32 to index
    %c7_98 = arith.constant 7 : index
    %c0_99 = arith.constant 0 : index
    %128 = vector.load %arg6[%127, %c7_98, %c0_99] : memref<18x32x128xf32, #tpu.memory_space<vmem>>, vector<8x16x128xf32>
    %129 = vector.broadcast %36 : vector<1x1x128xf32> to vector<8x16x128xf32>
    %130 = arith.mulf %128, %129 : vector<8x16x128xf32>
    %131 = arith.addf %125, %130 : vector<8x16x128xf32>
    %c1_i32_100 = arith.constant 1 : i32
    %132 = arith.addi %106, %c1_i32_100 : i32
    %133 = arith.index_cast %132 : i32 to index
    %c8_101 = arith.constant 8 : index
    %c0_102 = arith.constant 0 : index
    %134 = vector.load %arg6[%133, %c8_101, %c0_102] : memref<18x32x128xf32, #tpu.memory_space<vmem>>, vector<8x16x128xf32>
    %135 = vector.broadcast %37 : vector<1x1x128xf32> to vector<8x16x128xf32>
    %136 = arith.mulf %134, %135 : vector<8x16x128xf32>
    %137 = arith.addf %131, %136 : vector<8x16x128xf32>
    %c1_i32_103 = arith.constant 1 : i32
    %138 = arith.addi %106, %c1_i32_103 : i32
    %139 = arith.index_cast %138 : i32 to index
    %c9_104 = arith.constant 9 : index
    %c0_105 = arith.constant 0 : index
    %140 = vector.load %arg6[%139, %c9_104, %c0_105] : memref<18x32x128xf32, #tpu.memory_space<vmem>>, vector<8x16x128xf32>
    %141 = vector.broadcast %38 : vector<1x1x128xf32> to vector<8x16x128xf32>
    %142 = arith.mulf %140, %141 : vector<8x16x128xf32>
    %143 = arith.addf %137, %142 : vector<8x16x128xf32>
    %c2_i32_106 = arith.constant 2 : i32
    %144 = arith.addi %106, %c2_i32_106 : i32
    %145 = arith.index_cast %144 : i32 to index
    %c7_107 = arith.constant 7 : index
    %c0_108 = arith.constant 0 : index
    %146 = vector.load %arg6[%145, %c7_107, %c0_108] : memref<18x32x128xf32, #tpu.memory_space<vmem>>, vector<8x16x128xf32>
    %147 = vector.broadcast %39 : vector<1x1x128xf32> to vector<8x16x128xf32>
    %148 = arith.mulf %146, %147 : vector<8x16x128xf32>
    %149 = arith.addf %143, %148 : vector<8x16x128xf32>
    %c2_i32_109 = arith.constant 2 : i32
    %150 = arith.addi %106, %c2_i32_109 : i32
    %151 = arith.index_cast %150 : i32 to index
    %c8_110 = arith.constant 8 : index
    %c0_111 = arith.constant 0 : index
    %152 = vector.load %arg6[%151, %c8_110, %c0_111] : memref<18x32x128xf32, #tpu.memory_space<vmem>>, vector<8x16x128xf32>
    %153 = vector.broadcast %40 : vector<1x1x128xf32> to vector<8x16x128xf32>
    %154 = arith.mulf %152, %153 : vector<8x16x128xf32>
    %155 = arith.addf %149, %154 : vector<8x16x128xf32>
    %c2_i32_112 = arith.constant 2 : i32
    %156 = arith.addi %106, %c2_i32_112 : i32
    %157 = arith.index_cast %156 : i32 to index
    %c9_113 = arith.constant 9 : index
    %c0_114 = arith.constant 0 : index
    %158 = vector.load %arg6[%157, %c9_113, %c0_114] : memref<18x32x128xf32, #tpu.memory_space<vmem>>, vector<8x16x128xf32>
    %159 = vector.broadcast %41 : vector<1x1x128xf32> to vector<8x16x128xf32>
    %160 = arith.mulf %158, %159 : vector<8x16x128xf32>
    %161 = arith.addf %155, %160 : vector<8x16x128xf32>
    %c0_115 = arith.constant 0 : index
    %162 = arith.index_cast %106 : i32 to index
    %c0_116 = arith.constant 0 : index
    %c0_117 = arith.constant 0 : index
    %163 = vector.load %arg5[%c0_115, %162, %c0_116, %c0_117] : memref<1x16x16x128xf32, #tpu.memory_space<vmem>>, vector<1x8x16x128xf32>
    %164 = vector.shape_cast %163 : vector<1x8x16x128xf32> to vector<8x16x128xf32>
    %165 = vector.shape_cast %161 : vector<8x16x128xf32> to vector<1x8x16x128xf32>
    tpu.vector_store %arg5[%c0_115, %162, %c0_116, %c0_117], %165 {strides = array<i32>} : memref<1x16x16x128xf32, #tpu.memory_space<vmem>>, vector<1x8x16x128xf32>,
    %c2_i32_118 = arith.constant 2 : i32
    return
  }
  func.func @transform_0(%arg0: i32, %arg1: i32) -> (i32, i32, i32, i32) {
    %c0_i32 = arith.constant 0 : i32
    %c0_i32_0 = arith.constant 0 : i32
    %c0_i32_1 = arith.constant 0 : i32
    return %arg1, %c0_i32, %c0_i32_0, %arg0 : i32, i32, i32, i32
  }
  func.func @transform_1(%arg0: i32, %arg1: i32) -> (i32, i32, i32) {
    %c0_i32 = arith.constant 0 : i32
    %c0_i32_0 = arith.constant 0 : i32
    %c0_i32_1 = arith.constant 0 : i32
    return %c0_i32, %c0_i32_0, %arg0 : i32, i32, i32
  }
  func.func @transform_2(%arg0: i32, %arg1: i32) -> (i32, i32) {
    %c0_i32 = arith.constant 0 : i32
    %c0_i32_0 = arith.constant 0 : i32
    return %c0_i32, %arg0 : i32, i32
  }
  func.func @transform_3(%arg0: i32, %arg1: i32) -> (i32, i32, i32, i32) {
    %c0_i32 = arith.constant 0 : i32
    %c0_i32_0 = arith.constant 0 : i32
    %c0_i32_1 = arith.constant 0 : i32
    return %arg1, %c0_i32, %c0_i32_0, %arg0 : i32, i32, i32, i32
  }
}

</mosaic_0001>

<bundles_post_ra>
// kernel: tpu_custom_call.1
= control target key start
LH: loop header
LB: loop body
LE: loop exit
PB: predicated region body
PF: predicated region fallthrough
CT: control target
= control target key end

     0   :  { %8 = vsyncpa [#allocation4], 0  ;;  %s2595_s0 = inlined_call_operand.hbm [shape: f32[2,16,16,128], index: 0, kind: input, shape index: {}]   ;;  %s2596_s1 = inlined_call_operand.hbm [shape: f32[3,3,128], index: 1, kind: input, shape index: {}]   ;;  %s2597_s2 = inlined_call_operand.vmem [shape: f32[1,128], index: 2, kind: input, shape index: {}]   ;;  %s2598_s3 = inlined_call_operand.hbm [shape: f32[2,16,16,128], index: 3, kind: output, shape index: {}]  }
   0x1   :  { %10 = vsyncpa [#allocation4 + $0x1], 0 }
   0x2   :  { %11 = vsyncpa [#allocation7], 0 }
   0x3   :  { %12 = vsyncpa [#allocation5], 0 }
   0x4   :  { %14 = vsyncpa [#allocation5 + $0x1], 0  ;;  %s1779_s12 = smov 0   ;;  %s1781_s13 = smov 0  }
   0x5   :  { %s1783_s14 = smov 0   ;;  %s1785_s15 = smov 0  }
   0x6   :  { %s1787_s16 = smov 0   ;;  %s1789_s17 = smov 0  }
   0x7 LB: > { %s1450_s18 = sadd.s32 4294967295, %s1747_s17   ;;  %s1451_s19 = sadd.s32 4294967294, %s1747_s17   ;;  %s1747_s17 = sphi %s1789_s17, %s20_s17   ;;  %s1743_s16 = sphi %s1787_s16, %s2648_s16   ;;  %s1739_s15 = sphi %s1785_s15, %s2647_s15   ;;  %s1735_s14 = sphi %s1783_s14, %s2646_s14   ;;  %s1731_s13 = sphi %s1781_s13, %s2645_s13   ;;  %s1727_s12 = sphi %s1779_s12, %s2644_s12  }
   0x8   : > { %p54_p0 = scmp.ne.s32.totalorder %s1731_s13, %s1727_s12  ;;  %p1813_p1 = scmp.eq.s32.totalorder %s1450_s18, 0 }
   0x9   : > { %p1817_p2 = scmp.eq.s32.totalorder %s1450_s18, 1  ;;  %p138_p3 = scmp.eq.s32.totalorder %s1451_s19, 1 }
   0xa   : > { %s2615_s20 = scalar_select %p1813_p1, 1, 0 }
   0xb   : > { %s2616_s21 = scalar_select %p1817_p2, 1, 0 }
   0xc   : > { %p1823_p4 = por %p1813_p1, %p54_p0  ;;  %p1452_p5 = scmp.ge.s32.totalorder %s1747_s17, 1 }
   0xd   : > { %p1828_p6 = por %p138_p3, %p54_p0  ;;  %p145_p7 = scmp.lt.s32.totalorder %s1747_s17, 3 }
   0xe   : > { %s2617_s22 = scalar_select %p1823_p4, 1, 0 }
   0xf   : > { %s2618_s23 = scalar_select %p1828_p6, 1, 0 }
  0x10   : > { %p1833_p8 = pnand %p1452_p5, %p145_p7  ;;  %s1749_s25 = smov [#allocation6]  }
  0x11   : > { %s159_s26 = sshll.u32 %s1749_s25, 4  ;;  %s29_s28 = sadd.s32 1, %s1743_s16  ;;  %s160_s26 = int_to_ptr.vmem [resolvable:$true] %s159_s26 }
  0x12   : > { %s2619_s24 = scalar_select %p1833_p8, 1, 0 }
  0x13   : > { %p1520_p9 = pneg %p1833_p8  ;;  %s1603_s4 = scalar_lea.hbm %s2596_s1, 192 }
  0x14   : > { %p1604_p12 = scmp.ne.s32.totalorder %s2596_s1, %s1603_s4  ;;  %p1610_p5 = scmp.lt.u32.totalorder %s1603_s4, %s2596_s1 }
  0x15   : > { %p1842_p11 = pnand %p1520_p9, %p1813_p1 }
  0x17   : > { %p1605_p13 = pneg %p1842_p11 }
  0x19   : > { %p1606_p0 = pnand %p1605_p13, %p1604_p12 }
  0x1b   : > { %p1607_p3 = pneg %p1606_p0 }
  0x1d   : > { %p1612_p7 = pnand %p1610_p5, %p1607_p3 }
  0x1f   : > { %1615 = shalt.err (!%p1612_p7)
}
  0x20   : > { %s1616_s9 = scalar_lea.vmem %s160_s26, 192  ;;  %p1624_p1 = scmp.lt.s32.totalorder %s160_s26, %s160_s26 }
  0x21   : > { %p1617_p9 = scmp.ne.s32.totalorder %s160_s26, %s1616_s9  ;;  %p1625_p4 = scmp.lt.s32.totalorder %s1616_s9, %s1616_s9 }
  0x23   : > { %p1619_p10 = pnand %p1617_p9, %p1605_p13  ;;  %p1626_p8 = por %p1625_p4, %p1624_p1 }
  0x25   : > { %p1620_p6 = pneg %p1619_p10 }
  0x27   : > { %p1627_p2 = pnand %p1626_p8, %p1620_p6 }
  0x29   : > { %1630 = shalt.err (!%p1627_p2)
}
  0x2a   : > { %s1750_s10 = smov 64   ;;  %s1751_s11 = smov 4  }
  0x2b   : > { %1523 = dma.hbm_to_vmem [thread:$0]  (!%p1842_p11), %s2596_s1, 192, %s160_s26, [#allocation7], %s1750_s10, %s1750_s10, %s1751_s11  }
  0x2c   : > { %p30_p1 = scmp.ge.s32.totalorder %s29_s28, 2  ;;  %s41_s25 = sadd.s32 1, %s1735_s14 }
  0x2d   : > { %p48_p2 = scmp.ne.s32.totalorder %s1735_s14, %s1731_s13  ;;  %p49_p4 = scmp.eq.s32.totalorder %s1747_s17, 0 }
  0x2e   : > { %s2650_s28 = smov (%p30_p1, %s29_s28), 0  ;;  %p2622_p8 = scmp.ne.s32.totalorder %s2616_s21, 0 }
  0x2f   : > { %p1869_p6 = por %p49_p4, %p48_p2  ;;  %s36_s27 = ssub.s32 %s1743_s16, %s2650_s28 }
  0x30   : > { %p1875_p10 = por %p2622_p8, %p48_p2  ;;  %p1533_p12 = scmp.lt.s32.totalorder %s1747_s17, 2 }
  0x31   : > { %p39_p11 = scmp.eq.s32.totalorder %s36_s27, 0  ;;  %s179_s26 = sand.u32 1, %s1735_s14  }
  0x32   : > { %s1456_s4 = sshll.u32 %s179_s26, 8  ;;  %s1510_s6 = sshll.u32 %s1743_s16, 12 }
  0x33   : > { %s1884_s5 = scalar_select %p39_p11, %s1735_s14, %s41_s25  }
  0x34   : > { %s1890_s9 = scalar_lea.hbm %s2595_s0, %s1510_s6  ;;  %s183_s21 = scalar_lea.vmem [#allocation3], %s1456_s4 }
  0x35   : > { %s191_s10 = sshll.u32 %s183_s21, 4  ;;  %p1896_p13 = pnand %p1533_p12, %p1869_p6  ;;  %s1892_s10 = int_to_ptr.vmem [resolvable:$true] %s191_s10 }
  0x36   : > { %s1900_s18 = scalar_lea.sflag [#allocation4], %s179_s26  ;;  %s1631_s19 = scalar_lea.hbm %s1890_s9, 4096 }
  0x37   : > { %p1632_p0 = scmp.ne.s32.totalorder %s1890_s9, %s1631_s19  ;;  %p1633_p3 = pneg %p1896_p13 }
  0x38   : > { %s1636_s29 = scalar_lea.hbm %s2595_s0, 8192  ;;  %p1637_p9 = scmp.lt.u32.totalorder %s1890_s9, %s2595_s0 }
  0x39   : > { %p1634_p5 = pnand %p1633_p3, %p1632_p0  ;;  %p1638_p1 = scmp.lt.u32.totalorder %s1636_s29, %s1631_s19 }
  0x3a   : > { %p1640_p4 = scmp.lt.u32.totalorder %s1631_s19, %s1890_s9 }
  0x3b   : > { %p1635_p7 = pneg %p1634_p5  ;;  %p1639_p2 = por %p1638_p1, %p1637_p9 }
  0x3d   : > { %p1641_p6 = por %p1640_p4, %p1639_p2 }
  0x3f   : > { %p1642_p8 = pnand %p1641_p6, %p1635_p7 }
  0x41   : > { %1645 = shalt.err (!%p1642_p8)
}
  0x42   : > { %s1646_s26 = scalar_lea.vmem %s1892_s10, 4096  ;;  %s1752_s7 = smov [#allocation3]  }
  0x43   : > { %p1647_p12 = scmp.ne.s32.totalorder %s1892_s10, %s1646_s26  ;;  %s1651_s8 = sshll.u32 %s1752_s7, 4  ;;  %s1652_s8 = int_to_ptr.vmem [resolvable:$false] %s1651_s8 }
  0x44   : > { %s1653_s21 = scalar_lea.vmem %s1652_s8, 8192  ;;  %p1654_p5 = scmp.lt.s32.totalorder %s1892_s10, %s1652_s8 }
  0x45   : > { %p1649_p11 = pnand %p1647_p12, %p1633_p3  ;;  %p1655_p9 = scmp.lt.s32.totalorder %s1653_s21, %s1646_s26 }
  0x47   : > { %p1650_p0 = pneg %p1649_p11  ;;  %p1656_p1 = por %p1655_p9, %p1654_p5 }
  0x49   : > { %p1657_p2 = pnand %p1656_p1, %p1650_p0 }
  0x4b   : > { %1660 = shalt.err (!%p1657_p2)
}
  0x4c   : > { %s1753_s19 = smov 128   ;;  %s1754_s25 = smov 8  }
  0x4d   : > { %1527 = dma.hbm_to_vmem [thread:$0]  (!%p1896_p13), %s1890_s9, 4096, %s1892_s10, %s1900_s18, %s1753_s19, %s1753_s19, %s1754_s25  }
  0x4e   : > { %p2625_p3 = scmp.ne.s32.totalorder %s2619_s24, 0 }
  0x50   : > { %203 = sbr.rel (%p2625_p3) target bundleno = 293 (0x125), region = 32 }
  0x57   : > { %s1931_s27 = sand.u32 1, %s1731_s13   ;;  %p2626_p7 = scmp.ne.s32.totalorder %s2617_s22, 0 }
  0x58   : > { %s1460_s29 = sshll.u32 %s1931_s27, 8  ;;  %s206_s4 = scalar_lea.sflag [#allocation4], %s1931_s27 }
  0x59   : > { %s1937_s6 = scalar_lea.vmem [#allocation3], %s1460_s29 }
  0x5a   : > { %1714 = dma.done.wait (%p2626_p7), %s206_s4, 4096  }
  0x5b   : > { %1716 = vsyncadd (%p2626_p7), %s206_s4, 4294963200  ;;  %p2627_p13 = scmp.ne.s32.totalorder %s2615_s20, 0 }
  0x5d   : > { %1718 = dma.done.wait (%p2627_p13), [#allocation7], 192  }
  0x5e   : > { %1720 = vsyncadd (%p2627_p13), [#allocation7], 4294967104  ;;  %v1755_v0 = vmov 0.0   ;;  %v1948_v1 = vld [vmem:[%s1937_s6] sm:$0xff]  ;;  %v1951_v2 = vld [vmem:[%s1937_s6 + $0x8] sm:$0xff]  ;;  %s2170_s24 = scalar_lea.vmem [#allocation8], %s1460_s29 }
  0x5f   : > { %242 = vst [vmem:[#allocation2] sm:$0xff] %v1755_v0  ;;  %243 = vst [vmem:[#allocation2 + $0x8] sm:$0xff] %v1755_v0  ;;  %v1954_v3 = vld [vmem:[%s1937_s6 + $0x10] sm:$0xff]  ;;  %v1960_v4 = vld [vmem:[%s1937_s6 + $0x18] sm:$0xff]  ;;  %s1511_s11 = sshll.u32 %s1739_s15, 12  ;;  %s1334_s18 = sshll.u32 %s2170_s24, 4  ;;  %s2545_s18 = int_to_ptr.vmem [resolvable:$true] %s1334_s18 }
  0x60   : > { %244 = vst [vmem:[#allocation2 + $0x10] sm:$0xff] %v1755_v0  ;;  %245 = vst [vmem:[#allocation2 + $0x18] sm:$0xff] %v1755_v0  ;;  %v1963_v5 = vld [vmem:[%s1937_s6 + $0x20] sm:$0xff]  ;;  %v1966_v6 = vld [vmem:[%s1937_s6 + $0x28] sm:$0xff]  ;;  %s2543_s8 = scalar_lea.hbm %s2598_s3, %s1511_s11  ;;  %s1320_s21 = scalar_lea.sflag [#allocation5], %s1931_s27 }
  0x61   : > { %247 = vst [vmem:[#allocation2 + $0x220] sm:$0xff] %v1755_v0  ;;  %248 = vst [vmem:[#allocation2 + $0x228] sm:$0xff] %v1755_v0  ;;  %v1972_v7 = vld [vmem:[%s1937_s6 + $0x30] sm:$0xff]  ;;  %v1975_v8 = vld [vmem:[%s1937_s6 + $0x38] sm:$0xff]  ;;  %s1661_s19 = scalar_lea.vmem %s2545_s18, 4096  ;;  %s1756_s15 = smov [#allocation8]  }
  0x62   : > { %249 = vst [vmem:[#allocation2 + $0x230] sm:$0xff] %v1755_v0  ;;  %250 = vst [vmem:[#allocation2 + $0x238] sm:$0xff] %v1755_v0  ;;  %v1978_v9 = vld [vmem:[%s1937_s6 + $0x40] sm:$0xff]  ;;  %v1984_v10 = vld [vmem:[%s1937_s6 + $0x48] sm:$0xff]  ;;  %p1662_p4 = scmp.ne.s32.totalorder %s2545_s18, %s1661_s19  ;;  %s1665_s25 = sshll.u32 %s1756_s15, 4  ;;  %s1666_s25 = int_to_ptr.vmem [resolvable:$false] %s1665_s25 }
  0x63   : > { %254 = vst [vmem:[#allocation2 + $0x20] sm:$0xff] %v1755_v0  ;;  %255 = vst [vmem:[#allocation2 + $0x40] sm:$0xff] %v1755_v0  ;;  %v1987_v11 = vld [vmem:[%s1937_s6 + $0x50] sm:$0xff]  ;;  %v1990_v12 = vld [vmem:[%s1937_s6 + $0x58] sm:$0xff]  ;;  %s1667_s29 = scalar_lea.vmem %s1666_s25, 8192  ;;  %p1668_p12 = scmp.lt.s32.totalorder %s2545_s18, %s1666_s25 }
  0x64   : > { %256 = vst [vmem:[#allocation2 + $0x60] sm:$0xff] %v1755_v0  ;;  %257 = vst [vmem:[#allocation2 + $0x80] sm:$0xff] %v1755_v0  ;;  %v1996_v13 = vld [vmem:[%s1937_s6 + $0x60] sm:$0xff]  ;;  %v1999_v14 = vld [vmem:[%s1937_s6 + $0x68] sm:$0xff]  ;;  %p1663_p6 = pnand %p1662_p4, %p1875_p10  ;;  %p1669_p11 = scmp.lt.s32.totalorder %s1667_s29, %s1661_s19 }
  0x65   : > { %258 = vst [vmem:[#allocation2 + $0xa0] sm:$0xff] %v1755_v0  ;;  %259 = vst [vmem:[#allocation2 + $0xc0] sm:$0xff] %v1755_v0  ;;  %v2002_v15 = vld [vmem:[%s1937_s6 + $0x70] sm:$0xff]  ;;  %v2008_v16 = vld [vmem:[%s1937_s6 + $0x78] sm:$0xff] }
  0x66   : > { %260 = vst [vmem:[#allocation2 + $0xe0] sm:$0xff] %v1755_v0  ;;  %261 = vst [vmem:[#allocation2 + $0x100] sm:$0xff] %v1755_v0  ;;  %v2011_v17 = vld [vmem:[%s1937_s6 + $0x80] sm:$0xff]  ;;  %v2014_v18 = vld [vmem:[%s1937_s6 + $0x88] sm:$0xff]  ;;  %p1664_p8 = pneg %p1663_p6  ;;  %p1670_p0 = por %p1669_p11, %p1668_p12 }
  0x67   : > { %262 = vst [vmem:[#allocation2 + $0x38] sm:$0xff] %v1755_v0  ;;  %263 = vst [vmem:[#allocation2 + $0x58] sm:$0xff] %v1755_v0  ;;  %v2020_v19 = vld [vmem:[%s1937_s6 + $0x90] sm:$0xff]  ;;  %v1466_v20 = vld [vmem:[%s1937_s6 + $0x98] sm:$0xff] }
  0x68   : > { %264 = vst [vmem:[#allocation2 + $0x78] sm:$0xff] %v1755_v0  ;;  %265 = vst [vmem:[#allocation2 + $0x98] sm:$0xff] %v1755_v0  ;;  %v1467_v21 = vld [vmem:[%s1937_s6 + $0xa0] sm:$0xff]  ;;  %v1468_v22 = vld [vmem:[%s1937_s6 + $0xa8] sm:$0xff]  ;;  %p1671_p5 = pnand %p1670_p0, %p1664_p8 }
  0x69   : > { %266 = vst [vmem:[#allocation2 + $0xb8] sm:$0xff] %v1755_v0  ;;  %267 = vst [vmem:[#allocation2 + $0xd8] sm:$0xff] %v1755_v0  ;;  %v1469_v23 = vld [vmem:[%s1937_s6 + $0xb0] sm:$0xff]  ;;  %v1470_v24 = vld [vmem:[%s1937_s6 + $0xb8] sm:$0xff] }
  0x6a   : > { %268 = vst [vmem:[#allocation2 + $0xf8] sm:$0xff] %v1755_v0  ;;  %269 = vst [vmem:[#allocation2 + $0x118] sm:$0xff] %v1755_v0  ;;  %v1471_v25 = vld [vmem:[%s1937_s6 + $0xc0] sm:$0xff]  ;;  %v1472_v26 = vld [vmem:[%s1937_s6 + $0xc8] sm:$0xff] }
  0x6b   : > { %307 = vst [vmem:[#allocation2 + $0x120] sm:$0xff] %v1755_v0  ;;  %308 = vst [vmem:[#allocation2 + $0x140] sm:$0xff] %v1755_v0  ;;  %v1473_v27 = vld [vmem:[%s1937_s6 + $0xd0] sm:$0xff]  ;;  %v1474_v28 = vld [vmem:[%s1937_s6 + $0xd8] sm:$0xff] }
  0x6c   : > { %309 = vst [vmem:[#allocation2 + $0x160] sm:$0xff] %v1755_v0  ;;  %310 = vst [vmem:[#allocation2 + $0x180] sm:$0xff] %v1755_v0  ;;  %v1475_v29 = vld [vmem:[%s1937_s6 + $0xe0] sm:$0xff]  ;;  %v1476_v30 = vld [vmem:[%s1937_s6 + $0xe8] sm:$0xff] }
  0x6d   : > { %311 = vst [vmem:[#allocation2 + $0x1a0] sm:$0xff] %v1755_v0  ;;  %312 = vst [vmem:[#allocation2 + $0x1c0] sm:$0xff] %v1755_v0  ;;  %v1477_v31 = vld [vmem:[%s1937_s6 + $0xf0] sm:$0xff]  ;;  %v1478_v32 = vld [vmem:[%s1937_s6 + $0xf8] sm:$0xff] }
  0x6e   : > { %313 = vst [vmem:[#allocation2 + $0x1e0] sm:$0xff] %v1755_v0  ;;  %314 = vst [vmem:[#allocation2 + $0x200] sm:$0xff] %v1755_v0  ;;  %v2036_v33 = vld [vmem:[#allocation6] ss:$0 sm:$0xff]  ;;  %v2038_v34 = vld [vmem:[#allocation6 + $0x1] ss:$0 sm:$0xff] }
  0x6f   : > { %315 = vst [vmem:[#allocation2 + $0x138] sm:$0xff] %v1755_v0  ;;  %316 = vst [vmem:[#allocation2 + $0x158] sm:$0xff] %v1755_v0  ;;  %v2040_v35 = vld [vmem:[#allocation6 + $0x2] ss:$0 sm:$0xff]  ;;  %v2042_v36 = vld [vmem:[#allocation6 + $0x4] ss:$0 sm:$0xff]  ;;  %v451_v44 = vmul.f32 %v2038_v34, %v1948_v1  ;;  %v452_v45 = vmul.f32 %v2038_v34, %v1951_v2  ;;  %v2074_v52 = vmul.f32 %v2038_v34, %v1954_v3 }
  0x70   : > { %317 = vst [vmem:[#allocation2 + $0x178] sm:$0xff] %v1755_v0  ;;  %318 = vst [vmem:[#allocation2 + $0x198] sm:$0xff] %v1755_v0  ;;  %v2044_v37 = vld [vmem:[#allocation6 + $0x5] ss:$0 sm:$0xff]  ;;  %v2046_v38 = vld [vmem:[#allocation6 + $0x6] ss:$0 sm:$0xff] }
  0x71   : > { %319 = vst [vmem:[#allocation2 + $0x1b8] sm:$0xff] %v1755_v0  ;;  %320 = vst [vmem:[#allocation2 + $0x1d8] sm:$0xff] %v1755_v0  ;;  %v2048_v39 = vld [vmem:[#allocation6 + $0x8] ss:$0 sm:$0xff]  ;;  %v2050_v40 = vld [vmem:[#allocation6 + $0x9] ss:$0 sm:$0xff]  ;;  %v605_v49 = vmul.f32 %v2044_v37, %v1948_v1  ;;  %v2068_v50 = vmul.f32 %v2044_v37, %v1951_v2  ;;  %v607_v51 = vmul.f32 %v2044_v37, %v1954_v3 }
  0x72   : > { %321 = vst [vmem:[#allocation2 + $0x1f8] sm:$0xff] %v1755_v0  ;;  %322 = vst [vmem:[#allocation2 + $0x218] sm:$0xff] %v1755_v0  ;;  %v2052_v41 = vld [vmem:[#allocation6 + $0xa] ss:$0 sm:$0xff]  ;;  %v2057_v42 = vld [vmem:[%s2597_s2] ss:$0 sm:$0xff]  ;;  %v2079_v56 = vmul.f32 %v2050_v40, %v1954_v3  ;;  %v2084_v59 = vmul.f32 %v2044_v37, %v1960_v4  ;;  %v2089_v0 = vmul.f32 %v2050_v40, %v1960_v4 }
  0x73   : > { %288 = vst [vmem:[#allocation2 + $0x28] sm:$0xff] %v1948_v1  ;;  %289 = vst [vmem:[#allocation2 + $0x30] sm:$0xff] %v1951_v2  ;;  %v449_v43 = vmul.f32 0.0, %v2038_v34  ;;  %v371_v46 = vld [vmem:[#allocation2 + $0x7] sm:$0xff]  ;;  %v372_v61 = vld [vmem:[#allocation2 + $0xf] sm:$0xff]  ;;  %v2093_v1 = vmul.f32 %v2050_v40, %v1963_v5  ;;  %v2097_v2 = vmul.f32 %v2050_v40, %v1966_v6 }
  0x74   : > { %290 = vst [vmem:[#allocation2 + $0x48] sm:$0xff] %v1954_v3  ;;  %291 = vst [vmem:[#allocation2 + $0x50] sm:$0xff] %v1960_v4  ;;  %v481_v47 = vld [vmem:[#allocation2 + $0x9] sm:$0xff]  ;;  %v391_v53 = vmul.f32 %v2036_v33, %v371_v46  ;;  %v482_v62 = vld [vmem:[#allocation2 + $0x11] sm:$0xff] }
  0x75   : > { %292 = vst [vmem:[#allocation2 + $0x68] sm:$0xff] %v1963_v5  ;;  %293 = vst [vmem:[#allocation2 + $0x70] sm:$0xff] %v1966_v6  ;;  %v501_v60 = vmul.f32 %v2040_v35, %v481_v47 }
  0x76   : > { %294 = vst [vmem:[#allocation2 + $0x88] sm:$0xff] %v1972_v7  ;;  %295 = vst [vmem:[#allocation2 + $0x90] sm:$0xff] %v1975_v8  ;;  %v413_v3 = vadd.f32 %v2057_v42, %v391_v53 }
  0x77   : > { %296 = vst [vmem:[#allocation2 + $0xa8] sm:$0xff] %v1978_v9  ;;  %297 = vst [vmem:[#allocation2 + $0xb0] sm:$0xff] %v1984_v10 }
  0x78   : > { %298 = vst [vmem:[#allocation2 + $0xc8] sm:$0xff] %v1987_v11  ;;  %299 = vst [vmem:[#allocation2 + $0xd0] sm:$0xff] %v1990_v12 }
  0x79   : > { %2628 = vst [vmem:[#allocation12_spill] sm:$0xff] %v1996_v13  ;;  %2629 = vst [vmem:[#allocation13_spill] sm:$0xff] %v1999_v14 }
  0x7a   : > { %2630 = vst [vmem:[#allocation14_spill] sm:$0xff] %v2002_v15  ;;  %300 = vst [vmem:[#allocation2 + $0xe8] sm:$0xff] %v1996_v13  ;;  %v533_v48 = vld [vmem:[#allocation2 + $0x27] sm:$0xff]  ;;  %v534_v63 = vld [vmem:[#allocation2 + $0x2f] sm:$0xff] }
  0x7b   : > { %301 = vst [vmem:[#allocation2 + $0xf0] sm:$0xff] %v1999_v14  ;;  %302 = vst [vmem:[#allocation2 + $0x108] sm:$0xff] %v2002_v15  ;;  %v637_v54 = vld [vmem:[#allocation2 + $0x29] sm:$0xff]  ;;  %v393_v58 = vmul.f32 %v2036_v33, %v533_v48  ;;  %v554_v46 = vmul.f32 %v2042_v36, %v534_v63 }
  0x7c   : > { %2631 = vst [vmem:[#allocation15_spill] sm:$0xff] %v2008_v16  ;;  %2632 = vst [vmem:[#allocation16_spill] sm:$0xff] %v2011_v17  ;;  %v692_v55 = vld [vmem:[#allocation2 + $0x47] sm:$0xff] }
  0x7d   : > { %2633 = vst [vmem:[#allocation17_spill] sm:$0xff] %v2014_v18  ;;  %303 = vst [vmem:[#allocation2 + $0x110] sm:$0xff] %v2008_v16  ;;  %v796_v57 = vld [vmem:[#allocation2 + $0x49] sm:$0xff] }
  0x7e   : > { %341 = vst [vmem:[#allocation2 + $0x128] sm:$0xff] %v2011_v17  ;;  %342 = vst [vmem:[#allocation2 + $0x130] sm:$0xff] %v2014_v18  ;;  %v2114_v47 = vld [vmem:[#allocation2 + $0x67] sm:$0xff]  ;;  %v659_v17 = vmul.f32 %v2046_v38, %v796_v57 }
  0x7f   : > { %2634 = vst [vmem:[#allocation18_spill] sm:$0xff] %v2020_v19  ;;  %343 = vst [vmem:[#allocation2 + $0x148] sm:$0xff] %v2020_v19  ;;  %v2118_v19 = vld [vmem:[#allocation2 + $0x69] sm:$0xff]  ;;  %v714_v16 = vmul.f32 %v2048_v39, %v2114_v47 }
  0x80   : > { %344 = vst [vmem:[#allocation2 + $0x150] sm:$0xff] %v1466_v20  ;;  %345 = vst [vmem:[#allocation2 + $0x168] sm:$0xff] %v1467_v21  ;;  %v553_v20 = vmul.f32 %v2042_v36, %v533_v48  ;;  %v657_v21 = vmul.f32 %v2046_v38, %v637_v54 }
  0x81   : > { %346 = vst [vmem:[#allocation2 + $0x170] sm:$0xff] %v1468_v22  ;;  %347 = vst [vmem:[#allocation2 + $0x188] sm:$0xff] %v1469_v23  ;;  %v392_v22 = vmul.f32 %v2036_v33, %v372_v61  ;;  %v638_v23 = vld [vmem:[#allocation2 + $0x31] sm:$0xff] }
  0x82   : > { %348 = vst [vmem:[#allocation2 + $0x190] sm:$0xff] %v1470_v24  ;;  %349 = vst [vmem:[#allocation2 + $0x1a8] sm:$0xff] %v1471_v25  ;;  %v693_v24 = vld [vmem:[#allocation2 + $0x4f] sm:$0xff]  ;;  %v712_v25 = vmul.f32 %v2048_v39, %v692_v55  ;;  %v658_v48 = vmul.f32 %v2046_v38, %v638_v23 }
  0x83   : > { %350 = vst [vmem:[#allocation2 + $0x1b0] sm:$0xff] %v1472_v26  ;;  %351 = vst [vmem:[#allocation2 + $0x1c8] sm:$0xff] %v1473_v27  ;;  %v2105_v26 = vmul.f32 %v2052_v41, %v796_v57  ;;  %v2107_v27 = vld [vmem:[#allocation2 + $0x51] sm:$0xff]  ;;  %v713_v53 = vmul.f32 %v2048_v39, %v693_v24 }
  0x84   : > { %352 = vst [vmem:[#allocation2 + $0x1d0] sm:$0xff] %v1474_v28  ;;  %353 = vst [vmem:[#allocation2 + $0x1e8] sm:$0xff] %v1475_v29  ;;  %v415_v28 = vadd.f32 %v2057_v42, %v393_v58  ;;  %v503_v29 = vmul.f32 %v2040_v35, %v637_v54  ;;  %v394_v58 = vmul.f32 %v2036_v33, %v534_v63 }
  0x85   : > { %354 = vst [vmem:[#allocation2 + $0x1f0] sm:$0xff] %v1476_v30  ;;  %355 = vst [vmem:[#allocation2 + $0x208] sm:$0xff] %v1477_v31  ;;  %v465_v30 = vadd.f32 %v449_v43, %v413_v3  ;;  %v414_v31 = vadd.f32 %v2057_v42, %v392_v22  ;;  %v817_v3 = vmul.f32 %v2052_v41, %v2107_v27 }
  0x86   : > { %356 = vst [vmem:[#allocation2 + $0x210] sm:$0xff] %v1478_v32  ;;  %v502_v32 = vmul.f32 %v2040_v35, %v482_v62  ;;  %v467_v61 = vadd.f32 %v451_v44, %v415_v28  ;;  %v555_v62 = vmul.f32 %v2042_v36, %v692_v55  ;;  %v416_v15 = vadd.f32 %v2057_v42, %v394_v58 }
  0x87   : > { %v517_v18 = vadd.f32 %v501_v60, %v465_v30  ;;  %v466_v54 = vadd.f32 %v449_v43, %v414_v31  ;;  %v818_v63 = vmul.f32 %v2052_v41, %v2118_v19  ;;  %v2130_v60 = vld [vmem:[#allocation2 + $0x6f] sm:$0xff]  ;;  %v395_v43 = vmul.f32 %v2036_v33, %v692_v55 }
  0x88   : > { %v519_v22 = vadd.f32 %v503_v29, %v467_v61  ;;  %v468_v31 = vadd.f32 %v452_v45, %v416_v15  ;;  %v504_v29 = vmul.f32 %v2040_v35, %v638_v23  ;;  %v556_v61 = vmul.f32 %v2042_v36, %v693_v24  ;;  %v2142_v45 = vld [vmem:[#allocation2 + $0x71] sm:$0xff] }
  0x89   : > { %v569_v44 = vadd.f32 %v553_v20, %v517_v18  ;;  %v518_v28 = vadd.f32 %v502_v32, %v466_v54  ;;  %v660_v58 = vmul.f32 %v2046_v38, %v2107_v27  ;;  %v417_v18 = vadd.f32 %v2057_v42, %v395_v43 }
  0x8a   : > { %v571_v30 = vadd.f32 %v555_v62, %v519_v22  ;;  %v520_v32 = vadd.f32 %v504_v29, %v468_v31  ;;  %v715_v54 = vmul.f32 %v2048_v39, %v2130_v60  ;;  %v505_v55 = vmul.f32 %v2040_v35, %v796_v57 }
  0x8b   : > { %v621_v14 = vadd.f32 %v605_v49, %v569_v44  ;;  %v570_v13 = vadd.f32 %v554_v46, %v518_v28  ;;  %v469_v49 = vadd.f32 %v2074_v52, %v417_v18  ;;  %v557_v23 = vmul.f32 %v2042_v36, %v2114_v47 }
  0x8c   : > { %v623_v20 = vadd.f32 %v607_v51, %v571_v30  ;;  %v572_v22 = vadd.f32 %v556_v61, %v520_v32  ;;  %v609_v51 = vmul.f32 %v2044_v37, %v1963_v5  ;;  %v396_v44 = vmul.f32 %v2036_v33, %v693_v24  ;;  %v800_v32 = vld [vmem:[#allocation2 + $0x89] sm:$0xff] }
  0x8d   : > { %v673_v62 = vadd.f32 %v657_v21, %v621_v14  ;;  %v622_v15 = vadd.f32 %v2068_v50, %v570_v13  ;;  %v521_v57 = vadd.f32 %v505_v55, %v469_v49  ;;  %v454_v13 = vmul.f32 %v2038_v34, %v1960_v4  ;;  %v696_v4 = vld [vmem:[#allocation2 + $0x87] sm:$0xff] }
  0x8e   : > { %v675_v46 = vadd.f32 %v659_v17, %v623_v20  ;;  %v624_v50 = vadd.f32 %v2084_v59, %v572_v22  ;;  %v819_v52 = vmul.f32 %v2052_v41, %v2142_v45  ;;  %v418_v17 = vadd.f32 %v2057_v42, %v396_v44 }
  0x8f   : > { %v728_v28 = vadd.f32 %v712_v25, %v673_v62  ;;  %v674_v43 = vadd.f32 %v658_v48, %v622_v15  ;;  %v573_v31 = vadd.f32 %v557_v23, %v521_v57  ;;  %v661_v24 = vmul.f32 %v2046_v38, %v2118_v19  ;;  %v697_v62 = vld [vmem:[#allocation2 + $0x8f] sm:$0xff] }
  0x90   : > { %v730_v14 = vadd.f32 %v714_v16, %v675_v46  ;;  %v676_v48 = vadd.f32 %v660_v58, %v624_v50  ;;  %v470_v16 = vadd.f32 %v454_v13, %v418_v17  ;;  %v506_v59 = vmul.f32 %v2040_v35, %v2107_v27  ;;  %v801_v57 = vld [vmem:[#allocation2 + $0x91] sm:$0xff] }
  0x91   : > { %v780_v21 = vadd.f32 %v2079_v56, %v728_v28  ;;  %v729_v30 = vadd.f32 %v713_v53, %v674_v43  ;;  %v625_v18 = vadd.f32 %v609_v51, %v573_v31  ;;  %v558_v56 = vmul.f32 %v2042_v36, %v2130_v60 }
  0x92   : > { %v782_v25 = vadd.f32 %v2093_v1, %v730_v14  ;;  %v731_v20 = vadd.f32 %v715_v54, %v676_v48  ;;  %v522_v55 = vadd.f32 %v506_v59, %v470_v16  ;;  %v610_v1 = vmul.f32 %v2044_v37, %v1966_v6 }
  0x93   : > { %v832_v29 = vadd.f32 %v2105_v26, %v780_v21  ;;  %v781_v61 = vadd.f32 %v2089_v0, %v729_v30  ;;  %v677_v0 = vadd.f32 %v661_v24, %v625_v18  ;;  %v716_v27 = vmul.f32 %v2048_v39, %v696_v4  ;;  %v698_v24 = vld [vmem:[#allocation2 + $0xa7] sm:$0xff] }
  0x94   : > { %v834_v53 = vadd.f32 %v818_v63, %v782_v25  ;;  %v768_v63 = vmul.f32 %v2050_v40, %v1972_v7  ;;  %v783_v58 = vadd.f32 %v2097_v2, %v731_v20  ;;  %v574_v54 = vadd.f32 %v558_v56, %v522_v55 }
  0x95   : > { %849 = vst [vmem:[%s2170_s24] sm:$0xff] %v832_v29  ;;  %v833_v26 = vadd.f32 %v817_v3, %v781_v61  ;;  %v397_v15 = vmul.f32 %v2036_v33, %v2114_v47  ;;  %v455_v49 = vmul.f32 %v2038_v34, %v1963_v5  ;;  %v732_v3 = vadd.f32 %v716_v27, %v677_v0  ;;  %v802_v29 = vld [vmem:[#allocation2 + $0xa9] sm:$0xff] }
  0x96   : > { %851 = vst [vmem:[%s2170_s24 + $0x10] sm:$0xff] %v834_v53  ;;  %v820_v23 = vmul.f32 %v2052_v41, %v800_v32  ;;  %v835_v46 = vadd.f32 %v819_v52, %v783_v58  ;;  %v626_v22 = vadd.f32 %v610_v1, %v574_v54  ;;  %v662_v51 = vmul.f32 %v2046_v38, %v2142_v45  ;;  %v699_v0 = vld [vmem:[#allocation2 + $0xaf] sm:$0xff] }
  0x97   : > { %850 = vst [vmem:[%s2170_s24 + $0x8] sm:$0xff] %v833_v26  ;;  %v419_v2 = vadd.f32 %v2057_v42, %v397_v15  ;;  %v784_v44 = vadd.f32 %v768_v63, %v732_v3  ;;  %v717_v28 = vmul.f32 %v2048_v39, %v697_v62  ;;  %v769_v47 = vmul.f32 %v2050_v40, %v1975_v8 }
  0x98   : > { %v507_v5 = vmul.f32 %v2040_v35, %v2118_v19  ;;  %852 = vst [vmem:[%s2170_s24 + $0x18] sm:$0xff] %v835_v46  ;;  %v678_v43 = vadd.f32 %v662_v51, %v626_v22  ;;  %v398_v14 = vmul.f32 %v2036_v33, %v2130_v60  ;;  %v456_v50 = vmul.f32 %v2038_v34, %v1966_v6 }
  0x99   : > { %v471_v13 = vadd.f32 %v455_v49, %v419_v2  ;;  %v836_v52 = vadd.f32 %v820_v23, %v784_v44  ;;  %v559_v17 = vmul.f32 %v2042_v36, %v696_v4  ;;  %v611_v31 = vmul.f32 %v2044_v37, %v1972_v7  ;;  %v803_v49 = vld [vmem:[#allocation2 + $0xb1] sm:$0xff] }
  0x9a   : > { %v733_v21 = vadd.f32 %v717_v28, %v678_v43  ;;  %v420_v19 = vadd.f32 %v2057_v42, %v398_v14  ;;  %v821_v25 = vmul.f32 %v2052_v41, %v801_v57  ;;  %v663_v48 = vmul.f32 %v2046_v38, %v800_v32 }
  0x9b   : > { %v523_v30 = vadd.f32 %v507_v5, %v471_v13  ;;  %853 = vst [vmem:[%s2170_s24 + $0x20] sm:$0xff] %v836_v52  ;;  %v508_v60 = vmul.f32 %v2040_v35, %v2142_v45  ;;  %v399_v6 = vmul.f32 %v2036_v33, %v696_v4  ;;  %v457_v18 = vmul.f32 %v2038_v34, %v1972_v7 }
  0x9c   : > { %v785_v16 = vadd.f32 %v769_v47, %v733_v21  ;;  %v472_v61 = vadd.f32 %v456_v50, %v420_v19  ;;  %v718_v56 = vmul.f32 %v2048_v39, %v698_v24  ;;  %v770_v53 = vmul.f32 %v2050_v40, %v1978_v9  ;;  %v700_v50 = vld [vmem:[#allocation2 + $0xc7] sm:$0xff] }
  0x9d   : > { %v575_v59 = vadd.f32 %v559_v17, %v523_v30  ;;  %v560_v20 = vmul.f32 %v2042_v36, %v697_v62  ;;  %v421_v55 = vadd.f32 %v2057_v42, %v399_v6  ;;  %v612_v26 = vmul.f32 %v2044_v37, %v1975_v8 }
  0x9e   : > { %v837_v45 = vadd.f32 %v821_v25, %v785_v16  ;;  %v524_v4 = vadd.f32 %v508_v60, %v472_v61  ;;  %v822_v27 = vmul.f32 %v2052_v41, %v802_v29  ;;  %v664_v7 = vmul.f32 %v2046_v38, %v801_v57 }
  0x9f   : > { %v627_v1 = vadd.f32 %v611_v31, %v575_v59  ;;  %v473_v63 = vadd.f32 %v457_v18, %v421_v55  ;;  %v509_v58 = vmul.f32 %v2040_v35, %v800_v32  ;;  %v400_v3 = vmul.f32 %v2036_v33, %v697_v62  ;;  %v804_v18 = vld [vmem:[#allocation2 + $0xc9] sm:$0xff] }
  0xa0   : > { %854 = vst [vmem:[%s2170_s24 + $0x28] sm:$0xff] %v837_v45  ;;  %v576_v15 = vadd.f32 %v560_v20, %v524_v4  ;;  %v458_v23 = vmul.f32 %v2038_v34, %v1975_v8  ;;  %v719_v46 = vmul.f32 %v2048_v39, %v699_v0  ;;  %v561_v51 = vmul.f32 %v2042_v36, %v698_v24  ;;  %v805_v45 = vld [vmem:[#allocation2 + $0xd1] sm:$0xff] }
  0xa1   : > { %v679_v54 = vadd.f32 %v663_v48, %v627_v1  ;;  %v525_v22 = vadd.f32 %v509_v58, %v473_v63  ;;  %v613_v2 = vmul.f32 %v2044_v37, %v1978_v9  ;;  %v771_v32 = vmul.f32 %v2050_v40, %v1984_v10 }
  0xa2   : > { %v628_v28 = vadd.f32 %v612_v26, %v576_v15  ;;  %v422_v47 = vadd.f32 %v2057_v42, %v400_v3  ;;  %v823_v62 = vmul.f32 %v2052_v41, %v803_v49  ;;  %v665_v8 = vmul.f32 %v2046_v38, %v802_v29 }
  0xa3   : > { %v734_v44 = vadd.f32 %v718_v56, %v679_v54  ;;  %v577_v5 = vadd.f32 %v561_v51, %v525_v22  ;;  %v510_v43 = vmul.f32 %v2040_v35, %v801_v57  ;;  %v401_v17 = vmul.f32 %v2036_v33, %v698_v24  ;;  %v702_v22 = vld [vmem:[#allocation2 + $0xe7] sm:$0xff] }
  0xa4   : > { %v680_v14 = vadd.f32 %v664_v7, %v628_v28  ;;  %v474_v52 = vadd.f32 %v458_v23, %v422_v47  ;;  %v562_v30 = vmul.f32 %v2042_v36, %v699_v0  ;;  %v614_v31 = vmul.f32 %v2044_v37, %v1984_v10 }
  0xa5   : > { %v786_v13 = vadd.f32 %v770_v53, %v734_v44  ;;  %v629_v21 = vadd.f32 %v613_v2, %v577_v5  ;;  %v459_v19 = vmul.f32 %v2038_v34, %v1978_v9  ;;  %v423_v57 = vadd.f32 %v2057_v42, %v401_v17  ;;  %v701_v53 = vld [vmem:[#allocation2 + $0xcf] sm:$0xff] }
  0xa6   : > { %v735_v48 = vadd.f32 %v719_v46, %v680_v14  ;;  %v526_v60 = vadd.f32 %v510_v43, %v474_v52  ;;  %v720_v16 = vmul.f32 %v2048_v39, %v700_v50  ;;  %v772_v24 = vmul.f32 %v2050_v40, %v1987_v11 }
  0xa7   : > { %v838_v25 = vadd.f32 %v822_v27, %v786_v13  ;;  %v681_v6 = vadd.f32 %v665_v8, %v629_v21  ;;  %v666_v59 = vmul.f32 %v2046_v38, %v803_v49  ;;  %v475_v9 = vadd.f32 %v459_v19, %v423_v57  ;;  %v807_v57 = vld [vmem:[#allocation2 + $0xf1] sm:$0xff] }
  0xa8   : > { %v787_v61 = vadd.f32 %v771_v32, %v735_v48  ;;  %v578_v56 = vadd.f32 %v562_v30, %v526_v60  ;;  %v511_v20 = vmul.f32 %v2040_v35, %v802_v29  ;;  %v563_v1 = vmul.f32 %v2042_v36, %v700_v50  ;;  %v703_v60 = vld [vmem:[#allocation2 + $0xef] sm:$0xff] }
  0xa9   : > { %855 = vst [vmem:[%s2170_s24 + $0x30] sm:$0xff] %v838_v25  ;;  %v736_v55 = vadd.f32 %v720_v16, %v681_v6  ;;  %v402_v4 = vmul.f32 %v2036_v33, %v699_v0  ;;  %v460_v26 = vmul.f32 %v2038_v34, %v1984_v10  ;;  %v615_v58 = vmul.f32 %v2044_v37, %v1987_v11 }
  0xaa   : > { %v839_v27 = vadd.f32 %v823_v62, %v787_v61  ;;  %v630_v7 = vadd.f32 %v614_v31, %v578_v56  ;;  %v527_v63 = vadd.f32 %v511_v20, %v475_v9  ;;  %v824_v15 = vmul.f32 %v2052_v41, %v804_v18  ;;  %v806_v62 = vld [vmem:[#allocation2 + $0xe9] sm:$0xff] }
  0xab   : > { %v788_v54 = vadd.f32 %v772_v24, %v736_v55  ;;  %v721_v29 = vmul.f32 %v2048_v39, %v701_v53  ;;  %v424_v3 = vadd.f32 %v2057_v42, %v402_v4  ;;  %v773_v0 = vmul.f32 %v2050_v40, %v1990_v12  ;;  %v2636_v4 = vld [vmem:[#allocation13_spill] sm:$0xff] }
  0xac   : > { %856 = vst [vmem:[%s2170_s24 + $0x38] sm:$0xff] %v839_v27  ;;  %v682_v23 = vadd.f32 %v666_v59, %v630_v7  ;;  %v825_v10 = vmul.f32 %v2052_v41, %v805_v45  ;;  %v579_v46 = vadd.f32 %v563_v1, %v527_v63  ;;  %v667_v2 = vmul.f32 %v2046_v38, %v804_v18 }
  0xad   : > { %v840_v51 = vadd.f32 %v824_v15, %v788_v54  ;;  %v476_v44 = vadd.f32 %v460_v26, %v424_v3  ;;  %v512_v28 = vmul.f32 %v2040_v35, %v803_v49  ;;  %v403_v5 = vmul.f32 %v2036_v33, %v700_v50  ;;  %v2635_v49 = vld [vmem:[#allocation12_spill] sm:$0xff] }
  0xae   : > { %v737_v32 = vadd.f32 %v721_v29, %v682_v23  ;;  %v631_v47 = vadd.f32 %v615_v58, %v579_v46  ;;  %v461_v8 = vmul.f32 %v2038_v34, %v1987_v11  ;;  %v722_v43 = vmul.f32 %v2048_v39, %v702_v22  ;;  %v808_v3 = vld [vmem:[#allocation2 + $0x109] sm:$0xff] }
  0xaf   : > { %857 = vst [vmem:[%s2170_s24 + $0x40] sm:$0xff] %v840_v51  ;;  %v528_v13 = vadd.f32 %v512_v28, %v476_v44  ;;  %v564_v14 = vmul.f32 %v2042_v36, %v701_v53  ;;  %v616_v52 = vmul.f32 %v2044_v37, %v1990_v12  ;;  %v774_v30 = vmul.f32 %v2050_v40, %v2635_v49  ;;  %v2637_v28 = vld [vmem:[#allocation14_spill] sm:$0xff] }
  0xb0   : > { %v789_v17 = vadd.f32 %v773_v0, %v737_v32  ;;  %v683_v21 = vadd.f32 %v667_v2, %v631_v47  ;;  %v425_v50 = vadd.f32 %v2057_v42, %v403_v5  ;;  %v826_v31 = vmul.f32 %v2052_v41, %v806_v62  ;;  %v705_v47 = vld [vmem:[#allocation2 + $0x10f] sm:$0xff] }
  0xb1   : > { %v580_v11 = vadd.f32 %v564_v14, %v528_v13  ;;  %v513_v19 = vmul.f32 %v2040_v35, %v804_v18  ;;  %v404_v16 = vmul.f32 %v2036_v33, %v701_v53  ;;  %v668_v59 = vmul.f32 %v2046_v38, %v805_v45 }
  0xb2   : > { %v841_v25 = vadd.f32 %v825_v10, %v789_v17  ;;  %v738_v48 = vadd.f32 %v722_v43, %v683_v21  ;;  %v477_v6 = vadd.f32 %v461_v8, %v425_v50  ;;  %v565_v61 = vmul.f32 %v2042_v36, %v702_v22 }
  0xb3   : > { %v632_v24 = vadd.f32 %v616_v52, %v580_v11  ;;  %v462_v56 = vmul.f32 %v2038_v34, %v1990_v12  ;;  %v617_v18 = vmul.f32 %v2044_v37, %v2635_v49  ;;  %v426_v55 = vadd.f32 %v2057_v42, %v404_v16  ;;  %v704_v12 = vld [vmem:[#allocation2 + $0x107] sm:$0xff] }
  0xb4   : > { %858 = vst [vmem:[%s2170_s24 + $0x48] sm:$0xff] %v841_v25  ;;  %v790_v9 = vadd.f32 %v774_v30, %v738_v48  ;;  %v529_v20 = vadd.f32 %v513_v19, %v477_v6  ;;  %v723_v53 = vmul.f32 %v2048_v39, %v703_v60  ;;  %v775_v26 = vmul.f32 %v2050_v40, %v2636_v4  ;;  %v2638_v6 = vld [vmem:[#allocation15_spill] sm:$0xff] }
  0xb5   : > { %v684_v1 = vadd.f32 %v668_v59, %v632_v24  ;;  %v827_v27 = vmul.f32 %v2052_v41, %v807_v57  ;;  %v478_v58 = vadd.f32 %v462_v56, %v426_v55  ;;  %v514_v54 = vmul.f32 %v2040_v35, %v805_v45  ;;  %v809_v59 = vld [vmem:[#allocation2 + $0x111] sm:$0xff]  ;;  %v706_v56 = vld [vmem:[#allocation2 + $0x127] sm:$0xff] }
  0xb6   : > { %v842_v7 = vadd.f32 %v826_v31, %v790_v9  ;;  %v581_v63 = vadd.f32 %v565_v61, %v529_v20  ;;  %v669_v29 = vmul.f32 %v2046_v38, %v806_v62  ;;  %v405_v23 = vmul.f32 %v2036_v33, %v702_v22 }
  0xb7   : > { %v739_v15 = vadd.f32 %v723_v53, %v684_v1  ;;  %v463_v0 = vmul.f32 %v2038_v34, %v2635_v49  ;;  %v530_v46 = vadd.f32 %v514_v54, %v478_v58  ;;  %v566_v51 = vmul.f32 %v2042_v36, %v703_v60  ;;  %v2639_v54 = vld [vmem:[#allocation16_spill] sm:$0xff] }
  0xb8   : > { %859 = vst [vmem:[%s2170_s24 + $0x50] sm:$0xff] %v842_v7  ;;  %v633_v10 = vadd.f32 %v617_v18, %v581_v63  ;;  %v618_v2 = vmul.f32 %v2044_v37, %v2636_v4  ;;  %v724_v45 = vmul.f32 %v2048_v39, %v704_v12  ;;  %v776_v32 = vmul.f32 %v2050_v40, %v2637_v28 }
  0xb9   : > { %v791_v44 = vadd.f32 %v775_v26, %v739_v15  ;;  %v427_v22 = vadd.f32 %v2057_v42, %v405_v23  ;;  %v828_v8 = vmul.f32 %v2052_v41, %v808_v3  ;;  %v582_v43 = vadd.f32 %v566_v51, %v530_v46  ;;  %v810_v23 = vld [vmem:[#allocation2 + $0x129] sm:$0xff] }
  0xba   : > { %v685_v5 = vadd.f32 %v669_v29, %v633_v10  ;;  %v515_v13 = vmul.f32 %v2040_v35, %v806_v62  ;;  %v406_v17 = vmul.f32 %v2036_v33, %v703_v60  ;;  %v464_v21 = vmul.f32 %v2038_v34, %v2636_v4  ;;  %v707_v10 = vld [vmem:[#allocation2 + $0x12f] sm:$0xff] }
  0xbb   : > { %v843_v14 = vadd.f32 %v827_v27, %v791_v44  ;;  %v479_v52 = vadd.f32 %v463_v0, %v427_v22  ;;  %v634_v30 = vadd.f32 %v618_v2, %v582_v43  ;;  %v670_v50 = vmul.f32 %v2046_v38, %v807_v57  ;;  %v916_v2 = vld [vmem:[#allocation2 + $0x110] sm:$0xff] }
  0xbc   : > { %v740_v49 = vadd.f32 %v724_v45, %v685_v5  ;;  %v725_v31 = vmul.f32 %v2048_v39, %v705_v47  ;;  %v567_v19 = vmul.f32 %v2042_v36, %v704_v12  ;;  %v619_v62 = vmul.f32 %v2044_v37, %v2637_v28 }
  0xbd   : > { %860 = vst [vmem:[%s2170_s24 + $0x58] sm:$0xff] %v843_v14  ;;  %v531_v11 = vadd.f32 %v515_v13, %v479_v52  ;;  %v428_v25 = vadd.f32 %v2057_v42, %v406_v17  ;;  %v686_v60 = vadd.f32 %v670_v50, %v634_v30  ;;  %v777_v16 = vmul.f32 %v2050_v40, %v2638_v6  ;;  %v2640_v30 = vld [vmem:[#allocation17_spill] sm:$0xff] }
  0xbe   : > { %v792_v48 = vadd.f32 %v776_v32, %v740_v49  ;;  %v671_v24 = vmul.f32 %v2046_v38, %v808_v3  ;;  %v516_v20 = vmul.f32 %v2040_v35, %v807_v57  ;;  %v883_v18 = vmul.f32 %v2036_v33, %v704_v12 }
  0xbf   : > { %v583_v61 = vadd.f32 %v567_v19, %v531_v11  ;;  %v480_v9 = vadd.f32 %v464_v21, %v428_v25  ;;  %v741_v1 = vadd.f32 %v725_v31, %v686_v60  ;;  %v568_v53 = vmul.f32 %v2042_v36, %v705_v47  ;;  %v917_v31 = vld [vmem:[#allocation2 + $0x128] sm:$0xff] }
  0xc0   : > { %v844_v55 = vadd.f32 %v828_v8, %v792_v48  ;;  %v931_v4 = vmul.f32 %v2038_v34, %v2637_v28  ;;  %v620_v7 = vmul.f32 %v2044_v37, %v2638_v6  ;;  %v899_v63 = vadd.f32 %v2057_v42, %v883_v18  ;;  %v811_v8 = vld [vmem:[#allocation2 + $0x131] sm:$0xff]  ;;  %v1158_v19 = vld [vmem:[#allocation2 + $0x147] sm:$0xff] }
  0xc1   : > { %v635_v26 = vadd.f32 %v619_v62, %v583_v61  ;;  %v532_v27 = vadd.f32 %v516_v20, %v480_v9  ;;  %v793_v58 = vadd.f32 %v777_v16, %v741_v1  ;;  %v829_v57 = vmul.f32 %v2052_v41, %v809_v59  ;;  %v1060_v61 = vld [vmem:[#allocation2 + $0x130] sm:$0xff] }
  0xc2   : > { %861 = vst [vmem:[%s2170_s24 + $0x60] sm:$0xff] %v844_v55  ;;  %v726_v12 = vmul.f32 %v2048_v39, %v706_v56  ;;  %v778_v15 = vmul.f32 %v2050_v40, %v2639_v54  ;;  %v947_v46 = vadd.f32 %v931_v4, %v899_v63  ;;  %v979_v51 = vmul.f32 %v2040_v35, %v808_v3  ;;  %v2641_v4 = vld [vmem:[#allocation18_spill] sm:$0xff] }
  0xc3   : > { %v687_v29 = vadd.f32 %v671_v24, %v635_v26  ;;  %v584_v0 = vadd.f32 %v568_v53, %v532_v27  ;;  %v845_v44 = vadd.f32 %v829_v57, %v793_v58  ;;  %v672_v45 = vmul.f32 %v2046_v38, %v809_v59  ;;  %v1254_v26 = vld [vmem:[#allocation2 + $0x149] sm:$0xff] }
  0xc4   : > { %v1027_v28 = vmul.f32 %v2042_v36, %v706_v56  ;;  %v884_v32 = vmul.f32 %v2036_v33, %v705_v47  ;;  %v995_v43 = vadd.f32 %v979_v51, %v947_v46  ;;  %v1075_v13 = vmul.f32 %v2044_v37, %v2639_v54  ;;  %v1159_v54 = vld [vmem:[#allocation2 + $0x14f] sm:$0xff] }
  0xc5   : > { %v742_v22 = vadd.f32 %v726_v12, %v687_v29  ;;  %v636_v5 = vadd.f32 %v620_v7, %v584_v0  ;;  %862 = vst [vmem:[%s2170_s24 + $0x68] sm:$0xff] %v845_v44  ;;  %v830_v14 = vmul.f32 %v2052_v41, %v810_v23  ;;  %v727_v3 = vmul.f32 %v2048_v39, %v707_v10  ;;  %v1207_v51 = vld [vmem:[#allocation2 + $0x150] sm:$0xff] }
  0xc6   : > { %v900_v52 = vadd.f32 %v2057_v42, %v884_v32  ;;  %v932_v17 = vmul.f32 %v2038_v34, %v916_v2  ;;  %v779_v47 = vmul.f32 %v2050_v40, %v2640_v30  ;;  %v1043_v50 = vadd.f32 %v1027_v28, %v995_v43 }
  0xc7   : > { %v794_v21 = vadd.f32 %v778_v15, %v742_v22  ;;  %v688_v49 = vadd.f32 %v672_v45, %v636_v5  ;;  %v831_v11 = vmul.f32 %v2052_v41, %v811_v8  ;;  %v980_v25 = vmul.f32 %v2040_v35, %v809_v59  ;;  %v1061_v15 = vld [vmem:[#allocation2 + $0x148] sm:$0xff] }
  0xc8   : > { %v948_v62 = vadd.f32 %v932_v17, %v900_v52  ;;  %v885_v48 = vmul.f32 %v2036_v33, %v706_v56  ;;  %v1091_v16 = vadd.f32 %v1075_v13, %v1043_v50  ;;  %v1123_v24 = vmul.f32 %v2046_v38, %v810_v23  ;;  %v1208_v50 = vld [vmem:[#allocation2 + $0x168] sm:$0xff] }
  0xc9   : > { %v846_v60 = vadd.f32 %v830_v14, %v794_v21  ;;  %v743_v6 = vadd.f32 %v727_v3, %v688_v49  ;;  %v1028_v20 = vmul.f32 %v2042_v36, %v707_v10  ;;  %v933_v55 = vmul.f32 %v2038_v34, %v917_v31  ;;  %v1160_v14 = vld [vmem:[#allocation2 + $0x167] sm:$0xff] }
  0xca   : > { %v996_v9 = vadd.f32 %v980_v25, %v948_v62  ;;  %v901_v18 = vadd.f32 %v2057_v42, %v885_v48  ;;  %v1139_v53 = vadd.f32 %v1123_v24, %v1091_v16  ;;  %v1174_v59 = vmul.f32 %v2048_v39, %v1158_v19  ;;  %v1256_v16 = vld [vmem:[#allocation2 + $0x169] sm:$0xff] }
  0xcb   : > { %863 = vst [vmem:[%s2170_s24 + $0x70] sm:$0xff] %v846_v60  ;;  %v795_v1 = vadd.f32 %v779_v47, %v743_v6  ;;  %v1222_v56 = vmul.f32 %v2050_v40, %v2641_v4  ;;  %v1076_v7 = vmul.f32 %v2044_v37, %v1060_v61  ;;  %v981_v58 = vmul.f32 %v2040_v35, %v810_v23 }
  0xcc   : > { %v1044_v27 = vadd.f32 %v1028_v20, %v996_v9  ;;  %v949_v63 = vadd.f32 %v933_v55, %v901_v18  ;;  %v1190_v12 = vadd.f32 %v1174_v59, %v1139_v53  ;;  %v886_v29 = vmul.f32 %v2036_v33, %v707_v10  ;;  %v1255_v10 = vld [vmem:[#allocation2 + $0x151] sm:$0xff] }
  0xcd   : > { %v847_v57 = vadd.f32 %v831_v11, %v795_v1  ;;  %v1124_v46 = vmul.f32 %v2046_v38, %v811_v8  ;;  %v1029_v44 = vmul.f32 %v2042_v36, %v1158_v19  ;;  %v1270_v28 = vmul.f32 %v2052_v41, %v1254_v26  ;;  %v1161_v1 = vld [vmem:[#allocation2 + $0x16f] sm:$0xff] }
  0xce   : > { %v1092_v0 = vadd.f32 %v1076_v7, %v1044_v27  ;;  %v997_v2 = vadd.f32 %v981_v58, %v949_v63  ;;  %v1238_v45 = vadd.f32 %v1222_v56, %v1190_v12  ;;  %v902_v32 = vadd.f32 %v2057_v42, %v886_v29  ;;  %v1209_v53 = vld [vmem:[#allocation2 + $0x170] sm:$0xff] }
  0xcf   : > { %864 = vst [vmem:[%s2170_s24 + $0x78] sm:$0xff] %v847_v57  ;;  %v934_v23 = vmul.f32 %v2038_v34, %v1060_v61  ;;  %v1175_v5 = vmul.f32 %v2048_v39, %v1159_v54  ;;  %v1077_v13 = vmul.f32 %v2044_v37, %v1061_v15  ;;  %v1223_v52 = vmul.f32 %v2050_v40, %v1207_v51  ;;  %v1257_v57 = vld [vmem:[#allocation2 + $0x171] sm:$0xff] }
  0xd0   : > { %v1140_v22 = vadd.f32 %v1124_v46, %v1092_v0  ;;  %v1045_v43 = vadd.f32 %v1029_v44, %v997_v2  ;;  %v1286_v3 = vadd.f32 %v1270_v28, %v1238_v45  ;;  %v982_v21 = vmul.f32 %v2040_v35, %v811_v8  ;;  %v1162_v2 = vld [vmem:[#allocation2 + $0x187] sm:$0xff] }
  0xd1   : > { %v950_v17 = vadd.f32 %v934_v23, %v902_v32  ;;  %v1125_v47 = vmul.f32 %v2046_v38, %v1254_v26  ;;  %v887_v31 = vmul.f32 %v2036_v33, %v1158_v19  ;;  %v1271_v11 = vmul.f32 %v2052_v41, %v1255_v10  ;;  %v1210_v28 = vld [vmem:[#allocation2 + $0x188] sm:$0xff] }
  0xd2   : > { %v1191_v49 = vadd.f32 %v1175_v5, %v1140_v22  ;;  %v1093_v30 = vadd.f32 %v1077_v13, %v1045_v43  ;;  %1489 = vst [vmem:[%s2170_s24 + $0x80] sm:$0xff] %v1286_v3  ;;  %v1176_v62 = vmul.f32 %v2048_v39, %v1160_v14  ;;  %v1030_v48 = vmul.f32 %v2042_v36, %v1159_v54  ;;  %v1258_v43 = vld [vmem:[#allocation2 + $0x189] sm:$0xff] }
  0xd3   : > { %v998_v25 = vadd.f32 %v982_v21, %v950_v17  ;;  %v903_v8 = vadd.f32 %v2057_v42, %v887_v31  ;;  %v935_v24 = vmul.f32 %v2038_v34, %v1061_v15  ;;  %v1224_v61 = vmul.f32 %v2050_v40, %v1208_v50 }
  0xd4   : > { %v1239_v60 = vadd.f32 %v1223_v52, %v1191_v49  ;;  %v1141_v6 = vadd.f32 %v1125_v47, %v1093_v30  ;;  %v1078_v19 = vmul.f32 %v2044_v37, %v1207_v51  ;;  %v983_v20 = vmul.f32 %v2040_v35, %v1254_v26  ;;  %v1163_v47 = vld [vmem:[#allocation2 + $0x18f] sm:$0xff] }
  0xd5   : > { %v1046_v9 = vadd.f32 %v1030_v48, %v998_v25  ;;  %v951_v59 = vadd.f32 %v935_v24, %v903_v8  ;;  %v888_v4 = vmul.f32 %v2036_v33, %v1159_v54  ;;  %v1272_v56 = vmul.f32 %v2052_v41, %v1256_v16 }
  0xd6   : > { %v1287_v18 = vadd.f32 %v1271_v11, %v1239_v60  ;;  %v1192_v55 = vadd.f32 %v1176_v62, %v1141_v6  ;;  %v1126_v7 = vmul.f32 %v2046_v38, %v1255_v10  ;;  %v1031_v63 = vmul.f32 %v2042_v36, %v1160_v14  ;;  %v2398_v60 = vld [vmem:[#allocation2 + $0x190] sm:$0xff] }
  0xd7   : > { %v1094_v27 = vadd.f32 %v1078_v19, %v1046_v9  ;;  %v999_v12 = vadd.f32 %v983_v20, %v951_v59  ;;  %v904_v26 = vadd.f32 %v2057_v42, %v888_v4  ;;  %v936_v15 = vmul.f32 %v2038_v34, %v1207_v51 }
  0xd8   : > { %1490 = vst [vmem:[%s2170_s24 + $0x88] sm:$0xff] %v1287_v18  ;;  %v1240_v58 = vadd.f32 %v1224_v61, %v1192_v55  ;;  %v1177_v0 = vmul.f32 %v2048_v39, %v1161_v1  ;;  %v1225_v54 = vmul.f32 %v2050_v40, %v1209_v53  ;;  %v1079_v46 = vmul.f32 %v2044_v37, %v1208_v50 }
  0xd9   : > { %v1142_v29 = vadd.f32 %v1126_v7, %v1094_v27  ;;  %v1047_v45 = vadd.f32 %v1031_v63, %v999_v12  ;;  %v952_v32 = vadd.f32 %v936_v15, %v904_v26  ;;  %v984_v23 = vmul.f32 %v2040_v35, %v1255_v10  ;;  %v1259_v27 = vld [vmem:[#allocation2 + $0x191] sm:$0xff]  ;;  %v1164_v63 = vld [vmem:[#allocation2 + $0x1a7] sm:$0xff] }
  0xda   : > { %v1288_v44 = vadd.f32 %v1272_v56, %v1240_v58  ;;  %v1273_v5 = vmul.f32 %v2052_v41, %v1257_v57  ;;  %v1127_v51 = vmul.f32 %v2046_v38, %v1256_v16  ;;  %v889_v13 = vmul.f32 %v2036_v33, %v1160_v14 }
  0xdb   : > { %v1193_v22 = vadd.f32 %v1177_v0, %v1142_v29  ;;  %v1095_v3 = vadd.f32 %v1079_v46, %v1047_v45  ;;  %v1178_v52 = vmul.f32 %v2048_v39, %v1162_v2  ;;  %v1000_v17 = vadd.f32 %v984_v23, %v952_v32  ;;  %v1212_v46 = vld [vmem:[#allocation2 + $0x1a8] sm:$0xff] }
  0xdc   : > { %1491 = vst [vmem:[%s2170_s24 + $0x90] sm:$0xff] %v1288_v44  ;;  %v1032_v21 = vmul.f32 %v2042_v36, %v1161_v1  ;;  %v1226_v30 = vmul.f32 %v2050_v40, %v1210_v28  ;;  %v905_v10 = vadd.f32 %v2057_v42, %v889_v13  ;;  %v937_v31 = vmul.f32 %v2038_v34, %v1208_v50 }
  0xdd   : > { %v1241_v49 = vadd.f32 %v1225_v54, %v1193_v22  ;;  %v1143_v11 = vadd.f32 %v1127_v51, %v1095_v3  ;;  %v1274_v62 = vmul.f32 %v2052_v41, %v1258_v43  ;;  %v1080_v25 = vmul.f32 %v2044_v37, %v1209_v53  ;;  %v2428_v51 = vld [vmem:[#allocation6 + $0x6] ss:$0 sm:$0xff] }
  0xde   : > { %v1048_v14 = vadd.f32 %v1032_v21, %v1000_v17  ;;  %v953_v6 = vadd.f32 %v937_v31, %v905_v10  ;;  %v985_v8 = vmul.f32 %v2040_v35, %v1256_v16  ;;  %v890_v24 = vmul.f32 %v2036_v33, %v1161_v1  ;;  %v1213_v17 = vld [vmem:[#allocation2 + $0x1b0] sm:$0xff]  ;;  %v2441_v31 = vld [vmem:[#allocation6 + $0x8] ss:$0 sm:$0xff] }
  0xdf   : > { %v1289_v48 = vadd.f32 %v1273_v5, %v1241_v49  ;;  %v1194_v61 = vadd.f32 %v1178_v52, %v1143_v11  ;;  %v1128_v19 = vmul.f32 %v2046_v38, %v1257_v57  ;;  %v1179_v50 = vmul.f32 %v2048_v39, %v1163_v47  ;;  %v2422_v5 = vld [vmem:[#allocation6 + $0x2] ss:$0 sm:$0xff]  ;;  %v2434_v49 = vld [vmem:[#allocation6 + $0x4] ss:$0 sm:$0xff] }
  0xe0   : > { %v1096_v9 = vadd.f32 %v1080_v25, %v1048_v14  ;;  %v1001_v20 = vadd.f32 %v985_v8, %v953_v6  ;;  %v1033_v18 = vmul.f32 %v2042_v36, %v1162_v2  ;;  %v906_v55 = vadd.f32 %v2057_v42, %v890_v24  ;;  %v2450_v14 = vld [vmem:[#allocation6 + $0x1] ss:$0 sm:$0xff]  ;;  %v2454_v24 = vld [vmem:[#allocation6 + $0x5] ss:$0 sm:$0xff] }
  0xe1   : > { %1492 = vst [vmem:[%s2170_s24 + $0x98] sm:$0xff] %v1289_v48  ;;  %v938_v59 = vmul.f32 %v2038_v34, %v1209_v53  ;;  %v1242_v4 = vadd.f32 %v1226_v30, %v1194_v61  ;;  %v1227_v16 = vmul.f32 %v2050_v40, %v2398_v60  ;;  %v1081_v1 = vmul.f32 %v2044_v37, %v1210_v28  ;;  %v2438_v30 = vld [vmem:[#allocation6 + $0xa] ss:$0 sm:$0xff] }
  0xe2   : > { %v1144_v56 = vadd.f32 %v1128_v19, %v1096_v9  ;;  %v1049_v7 = vadd.f32 %v1033_v18, %v1001_v20  ;;  %v986_v12 = vmul.f32 %v2040_v35, %v1257_v57  ;;  %v891_v26 = vmul.f32 %v2036_v33, %v1162_v2  ;;  %v1261_v19 = vld [vmem:[#allocation2 + $0x1b1] sm:$0xff] }
  0xe3   : > { %v954_v58 = vadd.f32 %v938_v59, %v906_v55  ;;  %v1290_v15 = vadd.f32 %v1274_v62, %v1242_v4  ;;  %v1129_v53 = vmul.f32 %v2046_v38, %v1258_v43  ;;  %v1034_v0 = vmul.f32 %v2042_v36, %v1163_v47  ;;  %v1260_v38 = vld [vmem:[#allocation2 + $0x1a9] sm:$0xff] }
  0xe4   : > { %v1195_v29 = vadd.f32 %v1179_v50, %v1144_v56  ;;  %v1097_v54 = vadd.f32 %v1081_v1, %v1049_v7  ;;  %v907_v44 = vadd.f32 %v2057_v42, %v891_v26  ;;  %v939_v45 = vmul.f32 %v2038_v34, %v1210_v28  ;;  %v1165_v36 = vld [vmem:[#allocation2 + $0x1af] sm:$0xff]  ;;  %v2425_v28 = vld [vmem:[#allocation6 + $0x9] ss:$0 sm:$0xff] }
  0xe5   : > { %v1002_v40 = vadd.f32 %v986_v12, %v954_v58  ;;  %1493 = vst [vmem:[%s2170_s24 + $0xa0] sm:$0xff] %v1290_v15  ;;  %v1275_v23 = vmul.f32 %v2052_v41, %v1259_v27  ;;  %v1180_v35 = vmul.f32 %v2048_v39, %v1164_v63  ;;  %v1082_v33 = vmul.f32 %v2044_v37, %v2398_v60  ;;  %v2431_v37 = vld [vmem:[#allocation6] ss:$0 sm:$0xff]  ;;  %v1166_v50 = vld [vmem:[#allocation2 + $0x1c7] sm:$0xff] }
  0xe6   : > { %v1243_v32 = vadd.f32 %v1227_v16, %v1195_v29  ;;  %v1145_v57 = vadd.f32 %v1129_v53, %v1097_v54  ;;  %v955_v22 = vadd.f32 %v939_v45, %v907_v44  ;;  %v987_v42 = vmul.f32 %v2422_v5, %v1258_v43  ;;  %v1214_v16 = vld [vmem:[#allocation2 + $0x1c8] sm:$0xff] }
  0xe7   : > { %v1050_v2 = vadd.f32 %v1034_v0, %v1002_v40  ;;  %v1228_v41 = vmul.f32 %v2425_v28, %v1212_v46  ;;  %v1130_v39 = vmul.f32 %v2428_v51, %v1259_v27  ;;  %v892_v13 = vmul.f32 %v2431_v37, %v1163_v47  ;;  %v2447_v47 = vld [vmem:[%s2597_s2] ss:$0 sm:$0xff]  ;;  %v1262_v29 = vld [vmem:[#allocation2 + $0x1c9] sm:$0xff] }
  0xe8   : > { %v1291_v34 = vadd.f32 %v1275_v23, %v1243_v32  ;;  %v1196_v3 = vadd.f32 %v1180_v35, %v1145_v57  ;;  %v1003_v21 = vadd.f32 %v987_v42, %v955_v22  ;;  %v1035_v43 = vmul.f32 %v2434_v49, %v1164_v63  ;;  %v1215_v57 = vld [vmem:[#allocation2 + $0x1d0] sm:$0xff] }
  0xe9   : > { %v1098_v52 = vadd.f32 %v1082_v33, %v1050_v2  ;;  %v1276_v10 = vmul.f32 %v2438_v30, %v1260_v38  ;;  %v1181_v11 = vmul.f32 %v2441_v31, %v1165_v36  ;;  %v908_v62 = vadd.f32 %v2447_v47, %v892_v13 }
  0xea   : > { %1494 = vst [vmem:[%s2170_s24 + $0xa8] sm:$0xff] %v1291_v34  ;;  %v940_v25 = vmul.f32 %v2450_v14, %v2398_v60  ;;  %v1244_v48 = vadd.f32 %v1228_v41, %v1196_v3  ;;  %v1051_v8 = vadd.f32 %v1035_v43, %v1003_v21  ;;  %v1083_v61 = vmul.f32 %v2454_v24, %v1212_v46  ;;  %v1168_v21 = vld [vmem:[#allocation2 + $0x1e7] sm:$0xff] }
  0xeb   : > { %v1146_v6 = vadd.f32 %v1130_v39, %v1098_v52  ;;  %v1229_v9 = vmul.f32 %v2425_v28, %v1213_v17  ;;  %v988_v18 = vmul.f32 %v2422_v5, %v1259_v27  ;;  %v893_v55 = vmul.f32 %v2431_v37, %v1164_v63 }
  0xec   : > { %v956_v20 = vadd.f32 %v940_v25, %v908_v62  ;;  %v1292_v59 = vadd.f32 %v1276_v10, %v1244_v48  ;;  %v1099_v60 = vadd.f32 %v1083_v61, %v1051_v8  ;;  %v1131_v56 = vmul.f32 %v2428_v51, %v1260_v38 }
  0xed   : > { %v1197_v4 = vadd.f32 %v1181_v11, %v1146_v6  ;;  %v1036_v7 = vmul.f32 %v2434_v49, %v1165_v36  ;;  %v909_v58 = vadd.f32 %v2447_v47, %v893_v55  ;;  %v941_v12 = vmul.f32 %v2450_v14, %v1212_v46  ;;  %v1167_v46 = vld [vmem:[#allocation2 + $0x1cf] sm:$0xff] }
  0xee   : > { %v1004_v1 = vadd.f32 %v988_v18, %v956_v20  ;;  %1495 = vst [vmem:[%s2170_s24 + $0xb0] sm:$0xff] %v1292_v59  ;;  %v1277_v15 = vmul.f32 %v2438_v30, %v1261_v19  ;;  %v1147_v27 = vadd.f32 %v1131_v56, %v1099_v60  ;;  %v1182_v63 = vmul.f32 %v2441_v31, %v1166_v50 }
  0xef   : > { %v1245_v26 = vadd.f32 %v1229_v9, %v1197_v4  ;;  %v1084_v0 = vmul.f32 %v2454_v24, %v1213_v17  ;;  %v957_v54 = vadd.f32 %v941_v12, %v909_v58  ;;  %v989_v40 = vmul.f32 %v2422_v5, %v1260_v38  ;;  %v1264_v4 = vld [vmem:[#allocation2 + $0x1e9] sm:$0xff] }
  0xf0   : > { %v1052_v53 = vadd.f32 %v1036_v7, %v1004_v1  ;;  %v1198_v45 = vadd.f32 %v1182_v63, %v1147_v27  ;;  %v1230_v32 = vmul.f32 %v2425_v28, %v1214_v16  ;;  %v894_v23 = vmul.f32 %v2431_v37, %v1165_v36  ;;  %v1263_v36 = vld [vmem:[#allocation2 + $0x1d1] sm:$0xff] }
  0xf1   : > { %v1293_v44 = vadd.f32 %v1277_v15, %v1245_v26  ;;  %v1132_v33 = vmul.f32 %v2428_v51, %v1261_v19  ;;  %v1005_v2 = vadd.f32 %v989_v40, %v957_v54  ;;  %v1037_v22 = vmul.f32 %v2434_v49, %v1166_v50  ;;  %v1169_v26 = vld [vmem:[#allocation2 + $0x1ef] sm:$0xff] }
  0xf2   : > { %v1100_v35 = vadd.f32 %v1084_v0, %v1052_v53  ;;  %v1246_v42 = vadd.f32 %v1230_v32, %v1198_v45  ;;  %v1278_v34 = vmul.f32 %v2438_v30, %v1262_v29  ;;  %v910_v38 = vadd.f32 %v2447_v47, %v894_v23  ;;  %v1217_v40 = vld [vmem:[#allocation2 + $0x1f0] sm:$0xff] }
  0xf3   : > { %1496 = vst [vmem:[%s2170_s24 + $0xb8] sm:$0xff] %v1293_v44  ;;  %v942_v41 = vmul.f32 %v2450_v14, %v1213_v17  ;;  %v1183_v13 = vmul.f32 %v2441_v31, %v1167_v46  ;;  %v1053_v3 = vadd.f32 %v1037_v22, %v1005_v2  ;;  %v1085_v52 = vmul.f32 %v2454_v24, %v1214_v16  ;;  %v1216_v17 = vld [vmem:[#allocation2 + $0x1e8] sm:$0xff]  ;;  %v1265_v44 = vld [vmem:[#allocation2 + $0x1f1] sm:$0xff] }
  0xf4   : > { %v1148_v39 = vadd.f32 %v1132_v33, %v1100_v35  ;;  %v1294_v43 = vadd.f32 %v1278_v34, %v1246_v42  ;;  %v1231_v10 = vmul.f32 %v2425_v28, %v1215_v57  ;;  %v990_v62 = vmul.f32 %v2422_v5, %v1261_v19  ;;  %v1170_v22 = vld [vmem:[#allocation2 + $0x207] sm:$0xff] }
  0xf5   : > { %v958_v11 = vadd.f32 %v942_v41, %v910_v38  ;;  %v1101_v48 = vadd.f32 %v1085_v52, %v1053_v3  ;;  %v1133_v6 = vmul.f32 %v2428_v51, %v1262_v29  ;;  %v895_v8 = vmul.f32 %v2431_v37, %v1166_v50 }
  0xf6   : > { %v1199_v25 = vadd.f32 %v1183_v13, %v1148_v39  ;;  %1497 = vst [vmem:[%s2170_s24 + $0xc0] sm:$0xff] %v1294_v43  ;;  %v1279_v61 = vmul.f32 %v2438_v30, %v1263_v36  ;;  %v1184_v9 = vmul.f32 %v2441_v31, %v1168_v21  ;;  %v1038_v18 = vmul.f32 %v2434_v49, %v1167_v46 }
  0xf7   : > { %v1006_v20 = vadd.f32 %v990_v62, %v958_v11  ;;  %v1149_v59 = vadd.f32 %v1133_v6, %v1101_v48  ;;  %v911_v19 = vadd.f32 %v2447_v47, %v895_v8  ;;  %v943_v60 = vmul.f32 %v2450_v14, %v1214_v16  ;;  %v1218_v62 = vld [vmem:[#allocation2 + $0x208] sm:$0xff] }
  0xf8   : > { %v1247_v55 = vadd.f32 %v1231_v10, %v1199_v25  ;;  %v1232_v56 = vmul.f32 %v2425_v28, %v1216_v17  ;;  %v1086_v50 = vmul.f32 %v2454_v24, %v1215_v57  ;;  %v991_v7 = vmul.f32 %v2422_v5, %v1262_v29  ;;  %v1266_v6 = vld [vmem:[#allocation2 + $0x209] sm:$0xff] }
  0xf9   : > { %v1054_v1 = vadd.f32 %v1038_v18, %v1006_v20  ;;  %v1200_v12 = vadd.f32 %v1184_v9, %v1149_v59  ;;  %v959_v15 = vadd.f32 %v943_v60, %v911_v19  ;;  %v896_v27 = vmul.f32 %v2431_v37, %v1167_v46  ;;  %v1171_v20 = vld [vmem:[#allocation2 + $0x20f] sm:$0xff] }
  0xfa   : > { %v1295_v58 = vadd.f32 %v1279_v61, %v1247_v55  ;;  %v1280_v63 = vmul.f32 %v2438_v30, %v1264_v4  ;;  %v1134_v0 = vmul.f32 %v2428_v51, %v1263_v36  ;;  %v1039_v16 = vmul.f32 %v2434_v49, %v1168_v21 }
  0xfb   : > { %v1102_v53 = vadd.f32 %v1086_v50, %v1054_v1  ;;  %v1248_v54 = vadd.f32 %v1232_v56, %v1200_v12  ;;  %v1007_v45 = vadd.f32 %v991_v7, %v959_v15  ;;  %v912_v29 = vadd.f32 %v2447_v47, %v896_v27  ;;  %v1219_v50 = vld [vmem:[#allocation2 + $0x210] sm:$0xff]  ;;  %v1172_v27 = vld [vmem:[#allocation2 + $0x227] sm:$0xff] }
  0xfc   : > { %1498 = vst [vmem:[%s2170_s24 + $0xc8] sm:$0xff] %v1295_v58  ;;  %v944_v32 = vmul.f32 %v2450_v14, %v1215_v57  ;;  %v1185_v46 = vmul.f32 %v2441_v31, %v1169_v26  ;;  %v1087_v35 = vmul.f32 %v2454_v24, %v1216_v17  ;;  %v992_v34 = vmul.f32 %v2422_v5, %v1263_v36 }
  0xfd   : > { %v1150_v23 = vadd.f32 %v1134_v0, %v1102_v53  ;;  %v1296_v33 = vadd.f32 %v1280_v63, %v1248_v54  ;;  %v1055_v2 = vadd.f32 %v1039_v16, %v1007_v45  ;;  %v1233_v41 = vmul.f32 %v2425_v28, %v1217_v40  ;;  %v1267_v63 = vld [vmem:[#allocation2 + $0x211] sm:$0xff] }
  0xfe   : > { %v960_v42 = vadd.f32 %v944_v32, %v912_v29  ;;  %v1281_v39 = vmul.f32 %v2438_v30, %v1265_v44  ;;  %v897_v13 = vmul.f32 %v2431_v37, %v1168_v21  ;;  %v1135_v3 = vmul.f32 %v2428_v51, %v1264_v4 }
  0xff   : > { %v1201_v38 = vadd.f32 %v1185_v46, %v1150_v23  ;;  %1499 = vst [vmem:[%s2170_s24 + $0xd0] sm:$0xff] %v1296_v33  ;;  %v1103_v57 = vadd.f32 %v1087_v35, %v1055_v2  ;;  %v1040_v43 = vmul.f32 %v2434_v49, %v1169_v26  ;;  %v1186_v11 = vmul.f32 %v2441_v31, %v1170_v22  ;;  %v1173_v33 = vld [vmem:[#allocation2 + $0x22f] sm:$0xff] }
 0x100   : > { %v1008_v52 = vadd.f32 %v992_v34, %v960_v42  ;;  %v913_v36 = vadd.f32 %v2447_v47, %v897_v13  ;;  %v945_v25 = vmul.f32 %v2450_v14, %v1216_v17  ;;  %v1088_v21 = vmul.f32 %v2454_v24, %v1217_v40  ;;  %v1268_v34 = vld [vmem:[#allocation2 + $0x229] sm:$0xff] }
 0x101   : > { %v1249_v10 = vadd.f32 %v1233_v41, %v1201_v38  ;;  %v1151_v48 = vadd.f32 %v1135_v3, %v1103_v57  ;;  %v993_v61 = vmul.f32 %v2422_v5, %v1264_v4  ;;  %v1041_v55 = vmul.f32 %v2434_v49, %v1170_v22 }
 0x102   : > { %v1056_v8 = vadd.f32 %v1040_v43, %v1008_v52  ;;  %v961_v18 = vadd.f32 %v945_v25, %v913_v36  ;;  %v898_v59 = vmul.f32 %v2431_v37, %v1169_v26  ;;  %v1234_v60 = vmul.f32 %v2425_v28, %v1218_v62  ;;  %v1269_v52 = vld [vmem:[#allocation2 + $0x231] sm:$0xff] }
 0x103   : > { %v1297_v9 = vadd.f32 %v1281_v39, %v1249_v10  ;;  %v1202_v19 = vadd.f32 %v1186_v11, %v1151_v48  ;;  %v1136_v17 = vmul.f32 %v2428_v51, %v1265_v44  ;;  %v1282_v1 = vmul.f32 %v2438_v30, %v1266_v6 }
 0x104   : > { %v1104_v56 = vadd.f32 %v1088_v21, %v1056_v8  ;;  %v1009_v7 = vadd.f32 %v993_v61, %v961_v18  ;;  %v914_v4 = vadd.f32 %v2447_v47, %v898_v59  ;;  %v946_v58 = vmul.f32 %v2450_v14, %v1217_v40 }
 0x105   : > { %1500 = vst [vmem:[%s2170_s24 + $0xd8] sm:$0xff] %v1297_v9  ;;  %v1250_v12 = vadd.f32 %v1234_v60, %v1202_v19  ;;  %v1187_v37 = vmul.f32 %v2441_v31, %v1171_v20  ;;  %v1089_v26 = vmul.f32 %v2454_v24, %v1218_v62  ;;  %v994_v16 = vmul.f32 %v2422_v5, %v1265_v44  ;;  %v1602_v5 = vld [vmem:[#allocation2] sm:$0xff] }
 0x106   : > { %v1152_v15 = vadd.f32 %v1136_v17, %v1104_v56  ;;  %v1057_v53 = vadd.f32 %v1041_v55, %v1009_v7  ;;  %v962_v0 = vadd.f32 %v946_v58, %v914_v4  ;;  %v1042_v54 = vmul.f32 %v2434_v49, %v1171_v20 }
 0x107   : > { %v1298_v45 = vadd.f32 %v1282_v1, %v1250_v12  ;;  %v1235_v47 = vmul.f32 %v2425_v28, %v1219_v50  ;;  %v1137_v40 = vmul.f32 %v2428_v51, %v1266_v6  ;;  %v1188_v32 = vmul.f32 %v2441_v31, %v1172_v27 }
 0x108   : > { %v1203_v29 = vadd.f32 %v1187_v37, %v1152_v15  ;;  %v1105_v14 = vadd.f32 %v1089_v26, %v1057_v53  ;;  %v1010_v23 = vadd.f32 %v994_v16, %v962_v0  ;;  %v1283_v35 = vmul.f32 %v2438_v30, %v1267_v63 }
 0x109   : > { %1501 = vst [vmem:[%s2170_s24 + $0xe0] sm:$0xff] %v1298_v45  ;;  %v1236_v49 = vmul.f32 %v1602_v5, %v2425_v28  ;;  %v1090_v22 = vmul.f32 %v2454_v24, %v1219_v50  ;;  %v1138_v39 = vmul.f32 %v2428_v51, %v1267_v63  ;;  %v1189_v13 = vmul.f32 %v2441_v31, %v1173_v33 }
 0x10a   : > { %v1251_v46 = vadd.f32 %v1235_v47, %v1203_v29  ;;  %v1153_v2 = vadd.f32 %v1137_v40, %v1105_v14  ;;  %v1058_v44 = vadd.f32 %v1042_v54, %v1010_v23  ;;  %v1284_v28 = vmul.f32 %v2438_v30, %v1268_v34 }
 0x10b   : > { %v1285_v11 = vmul.f32 %v2438_v30, %v1269_v52 }
 0x10c   : > { %v1299_v42 = vadd.f32 %v1283_v35, %v1251_v46  ;;  %v1204_v38 = vadd.f32 %v1188_v32, %v1153_v2  ;;  %v1106_v41 = vadd.f32 %v1090_v22, %v1058_v44 }
 0x10e   : > { %1502 = vst [vmem:[%s2170_s24 + $0xe8] sm:$0xff] %v1299_v42  ;;  %v1252_v57 = vadd.f32 %v1236_v49, %v1204_v38  ;;  %v1154_v3 = vadd.f32 %v1138_v39, %v1106_v41 }
 0x110   : > { %v1300_v43 = vadd.f32 %v1284_v28, %v1252_v57  ;;  %v1205_v24 = vadd.f32 %v1189_v13, %v1154_v3 }
 0x112   : > { %1503 = vst [vmem:[%s2170_s24 + $0xf0] sm:$0xff] %v1300_v43  ;;  %v1253_v10 = vadd.f32 %v1236_v49, %v1205_v24 }
 0x114   : > { %v1301_v51 = vadd.f32 %v1285_v11, %v1253_v10 }
 0x116   : > { %1504 = vst [vmem:[%s2170_s24 + $0xf8] sm:$0xff] %v1301_v51 }
 0x117   : > { %1674 = shalt.err (!%p1671_p5)
}
 0x118   : > { %s1675_s4 = scalar_lea.hbm %s2543_s8, 4096  ;;  %s1679_s22 = scalar_lea.hbm %s2598_s3, 8192 }
 0x119   : > { %p1676_p9 = scmp.ne.s32.totalorder %s2543_s8, %s1675_s4  ;;  %p1680_p3 = scmp.lt.u32.totalorder %s2543_s8, %s2598_s3 }
 0x11a   : > { %p1681_p7 = scmp.lt.u32.totalorder %s1679_s22, %s1675_s4  ;;  %p1683_p4 = scmp.lt.u32.totalorder %s1675_s4, %s2543_s8 }
 0x11b   : > { %p1677_p1 = pnand %p1676_p9, %p1875_p10 }
 0x11c   : > { %p1682_p13 = por %p1681_p7, %p1680_p3 }
 0x11d   : > { %p1678_p2 = pneg %p1677_p1 }
 0x11e   : > { %p1684_p6 = por %p1683_p4, %p1682_p13 }
 0x120   : > { %p1685_p8 = pnand %p1684_p6, %p1678_p2 }
 0x122   : > { %1688 = shalt.err (!%p1685_p8)
}
 0x123   : > { %s1757_s10 = smov 128   ;;  %s1758_s11 = smov 8  }
 0x124   : > { %1518 = dma.vmem_to_hbm [thread:$0]  (%p1875_p10), %s2545_s18, 4096, %s2543_s8, %s1320_s21, %s1757_s10, %s1757_s10, %s1758_s11  }
 0x125 PF: > { %s1349_s26 = sand.u32 1, %s1727_s12   ;;  %p2642_p12 = scmp.ne.s32.totalorder %s2618_s23, 0 }
 0x126   : > { %p2643_p11 = scmp.ge.s32.totalorder %s1747_s17, 2  ;;  %s1350_s7 = scalar_lea.sflag [#allocation5], %s1349_s26 }
 0x128   : > { %p1529_p0 = pnand %p2643_p11, %p2642_p12 }
 0x12a   : > { %1722 = dma.done.wait (!%p1529_p0), %s1350_s7, 4096  }
 0x12b   : > { %1724 = vsyncadd (!%p1529_p0), %s1350_s7, 4294963200  ;;  %s20_s17 = sadd.s32 1, %s1747_s17   ;;  %s2644_s12 = smov %s1731_s13 }
 0x12c   : > { %p17_p5 = scmp.ge.s32.totalorder %s20_s17, 4   ;;  %s2645_s13 = smov %s1735_s14 }
 0x12d   : > { %s2646_s14 = smov %s1884_s5  ;;  %s2647_s15 = smov %s1743_s16 }
 0x12e   : > { %s2648_s16 = smov %s2650_s28  ;;  %19 = sbr.rel (!%p17_p5) target bundleno = 7 (0x7), region = 98 }
 0x135   :  { %1355 = vsyncpa [#allocation4], 1 }
 0x136   :  { %1357 = vsyncpa [#allocation4 + $0x1], 1 }
 0x137   :  { %1358 = vsyncpa [#allocation7], 1 }
 0x138   :  { %1359 = vsyncpa [#allocation5], 1 }
 0x139   :  { %1361 = vsyncpa [#allocation5 + $0x1], 1 }

</bundles_post_ra>
